<compile_context>
chip_gen: v5e
topology: v5e:2x2
jax: 0.10.0
libtpu: 0.0.40
codegen_flags: <defaults>
</compile_context>

<pallas_src>
import jax
import jax.numpy as jnp
from jax.experimental import pallas as pl
from jax.experimental.pallas import tpu as pltpu


_MIN_GRID_STEPS = 8    # >= 4 grid steps per TensorCore on v7x megacore
_MIN_TILE_ROWS = 256   # keep DMA chunks large enough to amortize ~0.35us/step


def _round_up(x, m):
    return ((x + m - 1) // m) * m


def _choose_tile_rows(R, max_tile_rows):
    """Pick a row-tile size: prefer an exact divisor of R (no pad / slice copies),
    aim for >= _MIN_GRID_STEPS grid steps and >= _MIN_TILE_ROWS rows per tile."""
    align = 16  # bf16 sublane packing (also a multiple of 8 for f32)
    cap = min(max_tile_rows,
              max(_MIN_TILE_ROWS, _round_up(pl.cdiv(R, _MIN_GRID_STEPS), align)))
    cap = max(align, (cap // align) * align)
    for tr in range(cap, align - 1, -align):
        if R % tr == 0:
            return tr, False          # exact tiling: zero extra HBM traffic
    if R <= max_tile_rows:
        return R, False               # single full-extent block (always legal)
    return cap, True                  # rare fallback: pad rows


def _pad_rows(arrs, R, R_pad):
    if R_pad == R:
        return arrs
    return [jnp.pad(a, ((0, R_pad - R), (0, 0))) for a in arrs]


def _output_bottleneck_kernel(x_ref, r1_ref, r2_ref, w1_ref, w2_ref, p2_ref, o_ref):
    # x: (TR, I); r1: (TR, T); r2: (TR, H) -- streamed, native dtype
    # w1: (I, T) bf16; w2: (T, H) bf16 (NoNorm1 pre-folded); p2: (3, H) f32 = [b2', nw2, nb2]
    y = jnp.dot(x_ref[...].astype(jnp.bfloat16), w1_ref[...],
                preferred_element_type=jnp.float32)          # dense (bf16 MXU, f32 acc)
    y = y + r1_ref[...].astype(jnp.float32)                  # + residual_tensor_1
    z = jnp.dot(y.astype(jnp.bfloat16), w2_ref[...],
                preferred_element_type=jnp.float32)          # bottleneck.dense (NoNorm1 folded)
    z = z + p2_ref[0:1, :]                                   # folded bias b2'
    # TODO(synk): dropout is the identity here (eval mode, no RNG path).
    z = z + r2_ref[...].astype(jnp.float32)                  # + residual_tensor_2
    o_ref[...] = (z * p2_ref[1:2, :] + p2_ref[2:3, :]).astype(o_ref.dtype)  # NoNorm2


def _output_no_bottleneck_kernel(x_ref, r1_ref, w1_ref, p1_ref, o_ref):
    # p1: (3, T) f32 = [b1, norm1_w, norm1_b]
    y = jnp.dot(x_ref[...].astype(jnp.bfloat16), w1_ref[...],
                preferred_element_type=jnp.float32)
    y = y + p1_ref[0:1, :]
    # TODO(synk): dropout is the identity here (eval mode, no RNG path).
    y = y + r1_ref[...].astype(jnp.float32)
    o_ref[...] = (y * p1_ref[1:2, :] + p1_ref[2:3, :]).astype(o_ref.dtype)


def _mobilebert_output_bottleneck_pallas(x, r1, r2, w1, w2, p2, *, tile_rows,
                                         out_dtype, vmem_limit_bytes):
    R, I = x.shape
    T = w1.shape[1]
    H = w2.shape[1]

    TR, need_pad = _choose_tile_rows(R, tile_rows)
    R_pad = _round_up(R, TR) if need_pad else R
    if need_pad:
        x, r1, r2 = _pad_rows([x, r1, r2], R, R_pad)

    grid = (R_pad // TR,)
    row_spec = lambda C: pl.BlockSpec((TR, C), lambda i: (i, 0))        # streamed per tile
    const_spec = lambda shape: pl.BlockSpec(shape, lambda i: (0, 0))    # resident in VMEM

    bytes_io = (x.size * x.dtype.itemsize + r1.size * r1.dtype.itemsize
                + r2.size * r2.dtype.itemsize
                + R_pad * H * jnp.dtype(out_dtype).itemsize
                + w1.size * 2 + w2.size * 2 + p2.size * 4)
    cost = pl.CostEstimate(flops=2 * R_pad * (I * T + T * H),
                           transcendentals=0, bytes_accessed=int(bytes_io))

    out = pl.pallas_call(
        _output_bottleneck_kernel,
        out_shape=jax.ShapeDtypeStruct((R_pad, H), out_dtype),
        grid_spec=pltpu.PrefetchScalarGridSpec(
            num_scalar_prefetch=0,
            grid=grid,
            in_specs=[
                row_spec(I),          # intermediate_states (streamed)
                row_spec(T),          # residual_tensor_1   (streamed)
                row_spec(H),          # residual_tensor_2   (streamed)
                const_spec((I, T)),   # W1 (bf16, resident)
                const_spec((T, H)),   # W2' = norm1_w * W2 (bf16, resident)
                const_spec((3, H)),   # [b2', norm2_w, norm2_b]
            ],
            out_specs=row_spec(H),
        ),
        compiler_params=pltpu.CompilerParams(
            dimension_semantics=("parallel",),         # megacore split on v7x
            vmem_limit_bytes=vmem_limit_bytes),
        cost_estimate=cost,
    )(x, r1, r2, w1, w2, p2)
    return out[:R] if need_pad else out


def _mobilebert_output_no_bottleneck_pallas(x, r1, w1, p1, *, tile_rows,
                                            out_dtype, vmem_limit_bytes):
    R, I = x.shape
    T = w1.shape[1]

    TR, need_pad = _choose_tile_rows(R, tile_rows)
    R_pad = _round_up(R, TR) if need_pad else R
    if need_pad:
        x, r1 = _pad_rows([x, r1], R, R_pad)

    grid = (R_pad // TR,)
    row_spec = lambda C: pl.BlockSpec((TR, C), lambda i: (i, 0))
    const_spec = lambda shape: pl.BlockSpec(shape, lambda i: (0, 0))

    bytes_io = (x.size * x.dtype.itemsize + r1.size * r1.dtype.itemsize
                + R_pad * T * jnp.dtype(out_dtype).itemsize
                + w1.size * 2 + p1.size * 4)
    cost = pl.CostEstimate(flops=2 * R_pad * I * T,
                           transcendentals=0, bytes_accessed=int(bytes_io))

    out = pl.pallas_call(
        _output_no_bottleneck_kernel,
        out_shape=jax.ShapeDtypeStruct((R_pad, T), out_dtype),
        grid_spec=pltpu.PrefetchScalarGridSpec(
            num_scalar_prefetch=0,
            grid=grid,
            in_specs=[
                row_spec(I),
                row_spec(T),
                const_spec((I, T)),
                const_spec((3, T)),
            ],
            out_specs=row_spec(T),
        ),
        compiler_params=pltpu.CompilerParams(
            dimension_semantics=("parallel",),
            vmem_limit_bytes=vmem_limit_bytes),
        cost_estimate=cost,
    )(x, r1, w1, p1)
    return out[:R] if need_pad else out


def mobilebert_output_forward(params, intermediate_states, residual_tensor_1,
                              residual_tensor_2=None, *, use_bottleneck=True,
                              tile_rows=1024, out_dtype=jnp.float32,
                              vmem_limit_bytes=None):
    """MobileBertOutput.forward (eval mode). Shapes:
       intermediate_states (B,S,I); residual_tensor_1 (B,S,T); residual_tensor_2 (B,S,H)."""
    B, S, I = intermediate_states.shape
    T = params["w1"].shape[1]

    x2 = intermediate_states.reshape(B * S, I)      # no dtype round-trip: stream native dtype
    r1 = residual_tensor_1.reshape(B * S, T)
    w1 = params["w1"].astype(jnp.bfloat16)          # bf16 weights for the MXU

    if use_bottleneck:
        if residual_tensor_2 is None:
            raise ValueError("use_bottleneck=True requires residual_tensor_2.")
        H = params["w2"].shape[1]
        r2 = residual_tensor_2.reshape(B * S, H)

        # Fold dense bias + NoNorm1 into the second matmul (one-time, param-sized precompute):
        #   W2' = norm1_w[:,None] * W2 ;  b2' = (b1*norm1_w + norm1_b) @ W2 + b2
        nw1 = params["norm1_w"].astype(jnp.float32)
        nb1 = params["norm1_b"].astype(jnp.float32)
        b1 = params["b1"].astype(jnp.float32)
        w2_f32 = params["w2"].astype(jnp.float32)
        w2 = (nw1[:, None] * w2_f32).astype(jnp.bfloat16)
        b2f = (b1 * nw1 + nb1) @ w2_f32 + params["b2"].astype(jnp.float32)
        p2 = jnp.stack([b2f,
                        params["norm2_w"].astype(jnp.float32),
                        params["norm2_b"].astype(jnp.float32)])

        out2 = _mobilebert_output_bottleneck_pallas(
            x2, r1, r2, w1, w2, p2, tile_rows=tile_rows, out_dtype=out_dtype,
            vmem_limit_bytes=vmem_limit_bytes)
        return out2.reshape(B, S, H)
    else:
        p1 = jnp.stack([params["b1"], params["norm1_w"],
                        params["norm1_b"]]).astype(jnp.float32)
        out2 = _mobilebert_output_no_bottleneck_pallas(
            x2, r1, w1, p1, tile_rows=tile_rows, out_dtype=out_dtype,
            vmem_limit_bytes=vmem_limit_bytes)
        return out2.reshape(B, S, T)


if __name__ == "__main__":
    key = jax.random.PRNGKey(0)
    # Small but lane-dense, MobileBERT-like feature dims.
    B, S = 2, 64
    intermediate_size, true_hidden_size, hidden_size = 512, 128, 512

    ks = jax.random.split(key, 11)
    params = {
        # torch Linear weight is (out, in); stored transposed here for y = x @ W
        "w1": jax.random.normal(ks[0], (intermediate_size, true_hidden_size), jnp.float32)
              * (1.0 / jnp.sqrt(intermediate_size)),
        "b1": 0.02 * jax.random.normal(ks[1], (true_hidden_size,), jnp.float32),
        "norm1_w": 1.0 + 0.1 * jax.random.normal(ks[2], (true_hidden_size,), jnp.float32),
        "norm1_b": 0.02 * jax.random.normal(ks[3], (true_hidden_size,), jnp.float32),
        "w2": jax.random.normal(ks[4], (true_hidden_size, hidden_size), jnp.float32)
              * (1.0 / jnp.sqrt(true_hidden_size)),
        "b2": 0.02 * jax.random.normal(ks[5], (hidden_size,), jnp.float32),
        "norm2_w": 1.0 + 0.1 * jax.random.normal(ks[6], (hidden_size,), jnp.float32),
        "norm2_b": 0.02 * jax.random.normal(ks[7], (hidden_size,), jnp.float32),
    }
    intermediate = jax.random.normal(ks[8], (B, S, intermediate_size), jnp.float32)
    residual1 = jax.random.normal(ks[9], (B, S, true_hidden_size), jnp.float32)
    residual2 = jax.random.normal(ks[10], (B, S, hidden_size), jnp.float32)

    # ---- use_bottleneck=True (MobileBERT default) ----
    out = mobilebert_output_forward(params, intermediate, residual1, residual2,
                                    use_bottleneck=True)
    out = jax.block_until_ready(out)

    # Pure-f32 reference of the module semantics (kernel uses bf16 MXU -> ~1e-2 abs diff).
    y = intermediate @ params["w1"] + params["b1"]
    y = (y + residual1) * params["norm1_w"] + params["norm1_b"]
    z = y @ params["w2"] + params["b2"]
    ref = (z + residual2) * params["norm2_w"] + params["norm2_b"]
    err = float(jnp.max(jnp.abs(out - ref)))
    assert jnp.allclose(out, ref, atol=3e-2, rtol=3e-2), f"bottleneck mismatch, max|diff|={err}"

    # ---- use_bottleneck=False branch ----
    out_nb = mobilebert_output_forward(params, intermediate, residual1,
                                       use_bottleneck=False)
    out_nb = jax.block_until_ready(out_nb)
    ref_nb = (intermediate @ params["w1"] + params["b1"] + residual1) \
             * params["norm1_w"] + params["norm1_b"]
    err_nb = float(jnp.max(jnp.abs(out_nb - ref_nb)))
    assert jnp.allclose(out_nb, ref_nb, atol=3e-2, rtol=3e-2), \
        f"no-bottleneck mismatch, max|diff|={err_nb}"

    print("KERNEL_OK")
</pallas_src>

<mosaic_0001>
module attributes {stable_mosaic.version = 11 : i64} {
  func.func @_output_bottleneck_kernel(%arg0: i32, %arg1: memref<128x512xf32, #tpu.memory_space<vmem>>, %arg2: memref<128x128xf32, #tpu.memory_space<vmem>>, %arg3: memref<128x512xf32, #tpu.memory_space<vmem>>, %arg4: memref<512x128xbf16, #tpu.memory_space<vmem>>, %arg5: memref<128x512xbf16, #tpu.memory_space<vmem>>, %arg6: memref<3x512xf32, #tpu.memory_space<vmem>>, %arg7: memref<128x512xf32, #tpu.memory_space<vmem>>) attributes {dimension_semantics = [#tpu.dimension_semantics<parallel>], iteration_bounds = array<i64: 1>, scalar_prefetch = 0 : i64, scratch_operands = 0 : i64, tpu.core_type = #tpu.core_type<tc>, window_params = [{transform_indices = @transform_0, window_bounds = array<i64: 128, 512>}, {transform_indices = @transform_1, window_bounds = array<i64: 128, 128>}, {transform_indices = @transform_2, window_bounds = array<i64: 128, 512>}, {pipeline_mode = #tpu.pipeline_mode<synchronous>, transform_indices = @transform_3, window_bounds = array<i64: 512, 128>}, {pipeline_mode = #tpu.pipeline_mode<synchronous>, transform_indices = @transform_4, window_bounds = array<i64: 128, 512>}, {pipeline_mode = #tpu.pipeline_mode<synchronous>, transform_indices = @transform_5, window_bounds = array<i64: 3, 512>}, {transform_indices = @transform_6, window_bounds = array<i64: 128, 512>}]} {
    %c0 = arith.constant 0 : index
    %c0_0 = arith.constant 0 : index
    %0 = vector.load %arg1[%c0, %c0_0] : memref<128x512xf32, #tpu.memory_space<vmem>>, vector<128x512xf32>
    %1 = arith.truncf %0 : vector<128x512xf32> to vector<128x512xbf16>
    %c0_1 = arith.constant 0 : index
    %c0_2 = arith.constant 0 : index
    %2 = vector.load %arg4[%c0_1, %c0_2] : memref<512x128xbf16, #tpu.memory_space<vmem>>, vector<512x128xbf16>
    %cst = arith.constant dense<0.000000e+00> : vector<128x128xf32>
    %3 = tpu.matmul %1, %2, %cst {dimension_numbers = #tpu.dot_dimension_numbers<[1], [0], [0], [1], [0, 0, 1, 1], [], []>} : vector<128x512xbf16>, vector<512x128xbf16>, vector<128x128xf32> -> vector<128x128xf32>
    %c0_3 = arith.constant 0 : index
    %c0_4 = arith.constant 0 : index
    %4 = vector.load %arg2[%c0_3, %c0_4] : memref<128x128xf32, #tpu.memory_space<vmem>>, vector<128x128xf32>
    %5 = arith.addf %3, %4 : vector<128x128xf32>
    %6 = arith.truncf %5 : vector<128x128xf32> to vector<128x128xbf16>
    %c0_5 = arith.constant 0 : index
    %c0_6 = arith.constant 0 : index
    %7 = vector.load %arg5[%c0_5, %c0_6] : memref<128x512xbf16, #tpu.memory_space<vmem>>, vector<128x512xbf16>
    %cst_7 = arith.constant dense<0.000000e+00> : vector<128x512xf32>
    %8 = tpu.matmul %6, %7, %cst_7 {dimension_numbers = #tpu.dot_dimension_numbers<[1], [0], [0], [1], [0, 0, 1, 1], [], []>} : vector<128x128xbf16>, vector<128x512xbf16>, vector<128x512xf32> -> vector<128x512xf32>
    %c0_8 = arith.constant 0 : index
    %c0_9 = arith.constant 0 : index
    %9 = vector.load %arg6[%c0_8, %c0_9] : memref<3x512xf32, #tpu.memory_space<vmem>>, vector<1x512xf32>
    %10 = vector.broadcast %9 : vector<1x512xf32> to vector<128x512xf32>
    %11 = arith.addf %8, %10 : vector<128x512xf32>
    %c0_10 = arith.constant 0 : index
    %c0_11 = arith.constant 0 : index
    %12 = vector.load %arg3[%c0_10, %c0_11] : memref<128x512xf32, #tpu.memory_space<vmem>>, vector<128x512xf32>
    %13 = arith.addf %11, %12 : vector<128x512xf32>
    %c1 = arith.constant 1 : index
    %c0_12 = arith.constant 0 : index
    %14 = vector.load %arg6[%c1, %c0_12] : memref<3x512xf32, #tpu.memory_space<vmem>>, vector<1x512xf32>
    %15 = vector.broadcast %14 : vector<1x512xf32> to vector<128x512xf32>
    %16 = arith.mulf %13, %15 : vector<128x512xf32>
    %c2 = arith.constant 2 : index
    %c0_13 = arith.constant 0 : index
    %17 = vector.load %arg6[%c2, %c0_13] : memref<3x512xf32, #tpu.memory_space<vmem>>, vector<1x512xf32>
    %18 = vector.broadcast %17 : vector<1x512xf32> to vector<128x512xf32>
    %19 = arith.addf %16, %18 : vector<128x512xf32>
    %c0_14 = arith.constant 0 : index
    %c0_15 = arith.constant 0 : index
    %20 = vector.load %arg7[%c0_14, %c0_15] : memref<128x512xf32, #tpu.memory_space<vmem>>, vector<128x512xf32>
    tpu.vector_store %arg7[%c0_14, %c0_15], %19 {strides = array<i32>} : memref<128x512xf32, #tpu.memory_space<vmem>>, vector<128x512xf32>,
    return
  }
  func.func @transform_0(%arg0: i32) -> (i32, i32) {
    %c0_i32 = arith.constant 0 : i32
    %c0_i32_0 = arith.constant 0 : i32
    return %arg0, %c0_i32 : i32, i32
  }
  func.func @transform_1(%arg0: i32) -> (i32, i32) {
    %c0_i32 = arith.constant 0 : i32
    %c0_i32_0 = arith.constant 0 : i32
    return %arg0, %c0_i32 : i32, i32
  }
  func.func @transform_2(%arg0: i32) -> (i32, i32) {
    %c0_i32 = arith.constant 0 : i32
    %c0_i32_0 = arith.constant 0 : i32
    return %arg0, %c0_i32 : i32, i32
  }
  func.func @transform_3(%arg0: i32) -> (i32, i32) {
    %c0_i32 = arith.constant 0 : i32
    %c0_i32_0 = arith.constant 0 : i32
    %c0_i32_1 = arith.constant 0 : i32
    return %c0_i32, %c0_i32_0 : i32, i32
  }
  func.func @transform_4(%arg0: i32) -> (i32, i32) {
    %c0_i32 = arith.constant 0 : i32
    %c0_i32_0 = arith.constant 0 : i32
    %c0_i32_1 = arith.constant 0 : i32
    return %c0_i32, %c0_i32_0 : i32, i32
  }
  func.func @transform_5(%arg0: i32) -> (i32, i32) {
    %c0_i32 = arith.constant 0 : i32
    %c0_i32_0 = arith.constant 0 : i32
    %c0_i32_1 = arith.constant 0 : i32
    return %c0_i32, %c0_i32_0 : i32, i32
  }
  func.func @transform_6(%arg0: i32) -> (i32, i32) {
    %c0_i32 = arith.constant 0 : i32
    %c0_i32_0 = arith.constant 0 : i32
    return %arg0, %c0_i32 : i32, i32
  }
}

</mosaic_0001>

<bundles_post_ra>
// kernel: tpu_custom_call.1
= control target key start
LH: loop header
LB: loop body
LE: loop exit
PB: predicated region body
PF: predicated region fallthrough
CT: control target
= control target key end

     0   :  { %11 = vsyncpa [#allocation3], 0  ;;  %s2259_s0 = inlined_call_operand.hbm [shape: f32[128,512], index: 0, kind: input, shape index: {}]   ;;  %s2260_s1 = inlined_call_operand.hbm [shape: f32[128,128], index: 1, kind: input, shape index: {}]   ;;  %s2261_s2 = inlined_call_operand.hbm [shape: f32[128,512], index: 2, kind: input, shape index: {}]   ;;  %s2262_s3 = inlined_call_operand.hbm [shape: bf16[512,128], index: 3, kind: input, shape index: {}]   ;;  %s2263_s4 = inlined_call_operand.hbm [shape: bf16[128,512], index: 4, kind: input, shape index: {}]   ;;  %s2264_s5 = inlined_call_operand.hbm [shape: f32[3,512], index: 5, kind: input, shape index: {}]   ;;  %s2265_s6 = inlined_call_operand.hbm [shape: f32[128,512], index: 6, kind: output, shape index: {}]  }
   0x1   :  { %12 = vsyncpa [#allocation6], 0 }
   0x2   :  { %13 = vsyncpa [#allocation9], 0 }
   0x3   :  { %14 = vsyncpa [#allocation12], 0  ;;  %s33_s23 = sshll.u32 %s2260_s1, 4  ;;  %s34_s23 = int_to_ptr.hbm [resolvable:$true] %s33_s23 }
   0x4   :  { %15 = vsyncpa [#allocation4], 0  ;;  %s1963_s24 = smov [#allocation5]   ;;  %s59_s28 = sshll.u32 %s2262_s3, 4  ;;  %s60_s28 = int_to_ptr.hbm [resolvable:$true] %s59_s28 }
   0x5   :  { %s35_s25 = sshll.u32 %s1963_s24, 4  ;;  %s1964_s29 = smov 128   ;;  %s36_s25 = int_to_ptr.vmem [resolvable:$true] %s35_s25 }
   0x6   :  { %s1965_s30 = smov 8   ;;  %s1966_s7 = smov [#allocation8]  }
   0x7   :  { %41 = dma.hbm_to_vmem [thread:$0]  %s34_s23, 2048, %s36_s25, [#allocation6], %s1964_s29, %s1964_s29, %s1965_s30  }
   0x8   :  { %s61_s8 = sshll.u32 %s1966_s7, 4  ;;  %s1967_s9 = smov 64   ;;  %s62_s8 = int_to_ptr.vmem [resolvable:$true] %s61_s8 }
   0x9   :  { %s1968_s10 = smov 4   ;;  %s20_s12 = sshll.u32 %s2259_s0, 4  ;;  %s21_s12 = int_to_ptr.hbm [resolvable:$true] %s20_s12 }
   0xa   :  { %67 = dma.hbm_to_vmem [thread:$0]  %s60_s28, 4096, %s62_s8, [#allocation9], %s1967_s9, %s1967_s9, %s1968_s10  }
   0xb   :  { %s1969_s13 = smov [#allocation2]   ;;  %s46_s16 = sshll.u32 %s2261_s2, 4  ;;  %s47_s16 = int_to_ptr.hbm [resolvable:$true] %s46_s16 }
   0xc   :  { %s22_s14 = sshll.u32 %s1969_s13, 4  ;;  %s1970_s17 = smov 512   ;;  %s23_s14 = int_to_ptr.vmem [resolvable:$true] %s22_s14 }
   0xd   :  { %s1971_s18 = smov 32   ;;  %s1972_s19 = smov [#allocation7]  }
   0xe   :  { %28 = dma.hbm_to_vmem [thread:$0]  %s21_s12, 8192, %s23_s14, [#allocation3], %s1970_s17, %s1970_s17, %s1971_s18  }
   0xf   :  { %s48_s20 = sshll.u32 %s1972_s19, 4  ;;  %s72_s0 = sshll.u32 %s2263_s4, 4  ;;  %s49_s20 = int_to_ptr.vmem [resolvable:$true] %s48_s20  ;;  %s73_s0 = int_to_ptr.hbm [resolvable:$true] %s72_s0 }
  0x10   :  { %54 = dma.hbm_to_vmem [thread:$0]  %s47_s16, 8192, %s49_s20, [#allocation6], %s1970_s17, %s1970_s17, %s1971_s18  }
  0x11   :  { %s1973_s2 = smov [#allocation10]   ;;  %s86_s26 = sshll.u32 %s2264_s5, 4  ;;  %s87_s26 = int_to_ptr.hbm [resolvable:$true] %s86_s26 }
  0x12   :  { %s74_s23 = sshll.u32 %s1973_s2, 4  ;;  %s1974_s27 = smov 256   ;;  %s75_s23 = int_to_ptr.vmem [resolvable:$true] %s74_s23 }
  0x13   :  { %s1975_s28 = smov 16   ;;  %s1976_s29 = smov [#allocation11]  }
  0x14   :  { %80 = dma.hbm_to_vmem [thread:$0]  %s73_s0, 4096, %s75_s23, [#allocation9], %s1974_s27, %s1974_s27, %s1975_s28  }
  0x15   :  { %s88_s30 = sshll.u32 %s1976_s29, 4  ;;  %s89_s30 = int_to_ptr.vmem [resolvable:$true] %s88_s30 }
  0x16   :  { %91 = dma.hbm_to_vmem [thread:$0]  %s87_s26, 256, %s89_s30, [#allocation12]  }
  0x17   :  { %1953 = dma.done.wait [#allocation3], 8192  }
  0x18   :  { %1954 = vsyncadd [#allocation3], 4294959104 }
  0x19   :  { %1955 = dma.done.wait [#allocation6], 10240  }
  0x1a   :  { %1956 = vsyncadd [#allocation6], 4294957056 }
  0x1b   :  { %1957 = dma.done.wait [#allocation9], 8192  }
  0x1c   :  { %1958 = vsyncadd [#allocation9], 4294959104 }
  0x1d   :  { %1959 = dma.done.wait [#allocation12], 256  }
  0x1e   :  { %1960 = vsyncadd [#allocation12], 4294967040  ;;  %v1713_v0 = vld [vmem:[#allocation8 + $0x38] sm:$0xff]  ;;  %v1712_v4 = vld [vmem:[#allocation8 + $0x30] sm:$0xff]  ;;  %s1977_s4 = smov [#allocation13]   ;;  %s1434_s9 = sshll.u32 %s2265_s6, 4  ;;  %s1435_s9 = int_to_ptr.hbm [resolvable:$true] %s1434_s9 }
  0x1f   :  { %v1721_v1 = vld [vmem:[#allocation8 + $0x78] sm:$0xff]  ;;  %484 = vmatpush.bf16.msra.mxu0 %v1713_v0  ;;  %v1720_v5 = vld [vmem:[#allocation8 + $0x70] sm:$0xff]  ;;  %v1711_v8 = vld [vmem:[#allocation8 + $0x28] sm:$0xff]  ;;  %s1432_s5 = sshll.u32 %s1977_s4, 4  ;;  %s1433_s5 = int_to_ptr.vmem [resolvable:$true] %s1432_s5 }
  0x20   :  { %v1729_v2 = vld [vmem:[#allocation8 + $0xb8] sm:$0xff]  ;;  %533 = vmatpush.bf16.msra.mxu1 %v1721_v1  ;;  %v1728_v6 = vld [vmem:[#allocation8 + $0xb0] sm:$0xff]  ;;  %v1719_v9 = vld [vmem:[#allocation8 + $0x68] sm:$0xff] }
  0x21   :  { %v1737_v3 = vld [vmem:[#allocation8 + $0xf8] sm:$0xff]  ;;  %582 = vmatpush.bf16.msra.mxu2 %v1729_v2  ;;  %v1736_v7 = vld [vmem:[#allocation8 + $0xf0] sm:$0xff]  ;;  %v1727_v10 = vld [vmem:[#allocation8 + $0xa8] sm:$0xff] }
  0x22   :  { %631 = vmatpush.bf16.msra.mxu3 %v1737_v3  ;;  %v1735_v11 = vld [vmem:[#allocation8 + $0xe8] sm:$0xff]  ;;  %v1710_v12 = vld [vmem:[#allocation8 + $0x20] sm:$0xff]  ;;  %v1709_v16 = vld [vmem:[#allocation8 + $0x18] sm:$0xff] }
  0x23   :  { %485 = vmatpush.bf16.msra.mxu0 %v1712_v4  ;;  %v1718_v13 = vld [vmem:[#allocation8 + $0x60] sm:$0xff]  ;;  %v1717_v17 = vld [vmem:[#allocation8 + $0x58] sm:$0xff]  ;;  %v1708_v20 = vld [vmem:[#allocation8 + $0x10] sm:$0xff] }
  0x24   :  { %534 = vmatpush.bf16.msra.mxu1 %v1720_v5  ;;  %v1726_v14 = vld [vmem:[#allocation8 + $0xa0] sm:$0xff]  ;;  %v1725_v18 = vld [vmem:[#allocation8 + $0x98] sm:$0xff]  ;;  %v1716_v21 = vld [vmem:[#allocation8 + $0x50] sm:$0xff] }
  0x25   :  { %583 = vmatpush.bf16.msra.mxu2 %v1728_v6  ;;  %v1734_v15 = vld [vmem:[#allocation8 + $0xe0] sm:$0xff]  ;;  %v1733_v19 = vld [vmem:[#allocation8 + $0xd8] sm:$0xff]  ;;  %v1724_v22 = vld [vmem:[#allocation8 + $0x90] sm:$0xff] }
  0x26   :  { %632 = vmatpush.bf16.msra.mxu3 %v1736_v7  ;;  %v1732_v23 = vld [vmem:[#allocation8 + $0xd0] sm:$0xff]  ;;  %v1707_v24 = vld [vmem:[#allocation8 + $0x8] sm:$0xff]  ;;  %v1706_v28 = vld [vmem:[#allocation8] sm:$0xff] }
  0x27   :  { %486 = vmatpush.bf16.msra.mxu0 %v1711_v8  ;;  %v1715_v25 = vld [vmem:[#allocation8 + $0x48] sm:$0xff]  ;;  %v1714_v29 = vld [vmem:[#allocation8 + $0x40] sm:$0xff]  ;;  %v1769_v36 = vld [vmem:[#allocation10 + $0xf4] sm:$0xf0] }
  0x28   :  { %535 = vmatpush.bf16.msra.mxu1 %v1719_v9  ;;  %v1723_v26 = vld [vmem:[#allocation8 + $0x88] sm:$0xff]  ;;  %v116_v30 = vld [vmem:[#allocation2] sm:$0xff]  ;;  %v1702_v38 = vld [vmem:[#allocation10 + $0xf8] sm:$0xf0] }
  0x29   :  { %584 = vmatpush.bf16.msra.mxu2 %v1727_v10  ;;  %v1731_v27 = vld [vmem:[#allocation8 + $0xc8] sm:$0xff]  ;;  %v120_v31 = vld [vmem:[#allocation2 + $0x20] sm:$0xff]  ;;  %v118_v40 = vld [vmem:[#allocation2 + $0x10] sm:$0xff] }
  0x2a   :  { %633 = vmatpush.bf16.msra.mxu3 %v1735_v11  ;;  %v117_v32 = vld [vmem:[#allocation2 + $0x8] sm:$0xff]  ;;  %v1722_v34 = vld [vmem:[#allocation8 + $0x80] sm:$0xff]  ;;  %v122_v41 = vld [vmem:[#allocation2 + $0x30] sm:$0xff]  ;;  %v180_v50 = vpack.c.bf16 %v120_v31, %v116_v30 }
  0x2b   :  { %487 = vmatpush.bf16.msra.mxu0 %v1710_v12  ;;  %v1700_v33 = vld [vmem:[#allocation10 + $0xe8] sm:$0xf]  ;;  %v1730_v35 = vld [vmem:[#allocation8 + $0xc0] sm:$0xff]  ;;  %v1767_v37 = vld [vmem:[#allocation10 + $0xec] sm:$0xf]  ;;  %v182_v52 = vpack.c.bf16 %v122_v41, %v118_v40 }
  0x2c   :  { %536 = vmatpush.bf16.msra.mxu1 %v1718_v13  ;;  %v121_v39 = vld [vmem:[#allocation2 + $0x28] sm:$0xff]  ;;  %v119_v42 = vld [vmem:[#allocation2 + $0x18] sm:$0xff]  ;;  %v1692_v44 = vld [vmem:[#allocation10 + $0xe0] sm:$0xf]  ;;  %v1701_v45 = vor.u32 %v1769_v36, %v1700_v33  ;;  %v1705_v46 = vor.u32 %v1767_v37, %v1702_v38 }
  0x2d   :  { %585 = vmatpush.bf16.msra.mxu2 %v1726_v14  ;;  %v123_v43 = vld [vmem:[#allocation2 + $0x38] sm:$0xff]  ;;  %v1768_v47 = vld [vmem:[#allocation10 + $0xec] sm:$0xf0]  ;;  %v1766_v48 = vld [vmem:[#allocation10 + $0xe4] sm:$0xf]  ;;  %v181_v51 = vpack.c.bf16 %v121_v39, %v117_v32 }
  0x2e   :  { %634 = vmatpush.bf16.msra.mxu3 %v1734_v15  ;;  %v1694_v49 = vld [vmem:[#allocation10 + $0xf0] sm:$0xf0]  ;;  %v183_v53 = vpack.c.bf16 %v123_v43, %v119_v42  ;;  %v1693_v54 = vor.u32 %v1768_v47, %v1692_v44  ;;  %v1684_v56 = vld [vmem:[#allocation10 + $0xc8] sm:$0xf]  ;;  %v1765_v57 = vld [vmem:[#allocation10 + $0xd4] sm:$0xf0] }
  0x2f   :  { %488 = vmatpush.bf16.msra.mxu0 %v1709_v16  ;;  %v1697_v55 = vor.u32 %v1766_v48, %v1694_v49  ;;  %v1763_v58 = vld [vmem:[#allocation10 + $0xcc] sm:$0xf]  ;;  %v1685_v59 = vor.u32 %v1765_v57, %v1684_v56  ;;  %v1686_v60 = vld [vmem:[#allocation10 + $0xd8] sm:$0xf0]  ;;  %v1676_v61 = vld [vmem:[#allocation10 + $0xc0] sm:$0xf] }
  0x30   :  { %537 = vmatpush.bf16.msra.mxu1 %v1717_v17  ;;  %v1764_v62 = vld [vmem:[#allocation10 + $0xcc] sm:$0xf0]  ;;  %v1689_v63 = vor.u32 %v1763_v58, %v1686_v60  ;;  %v1762_v1 = vld [vmem:[#allocation10 + $0xc4] sm:$0xf]  ;;  %v1678_v2 = vld [vmem:[#allocation10 + $0xd0] sm:$0xf0] }
  0x31   :  { %586 = vmatpush.bf16.msra.mxu2 %v1725_v18  ;;  %v1677_v0 = vor.u32 %v1764_v62, %v1676_v61  ;;  %v1681_v3 = vor.u32 %v1762_v1, %v1678_v2  ;;  %v124_v4 = vld [vmem:[#allocation2 + $0x40] sm:$0xff]  ;;  %v125_v6 = vld [vmem:[#allocation2 + $0x48] sm:$0xff]  ;;  %v126_v8 = vld [vmem:[#allocation2 + $0x50] sm:$0xff] }
  0x32   :  { %635 = vmatpush.bf16.msra.mxu3 %v1733_v19  ;;  %v128_v5 = vld [vmem:[#allocation2 + $0x60] sm:$0xff]  ;;  %v129_v7 = vld [vmem:[#allocation2 + $0x68] sm:$0xff]  ;;  %v130_v9 = vld [vmem:[#allocation2 + $0x70] sm:$0xff] }
  0x33   :  { %489 = vmatpush.bf16.msra.mxu0 %v1708_v20  ;;  %v127_v10 = vld [vmem:[#allocation2 + $0x58] sm:$0xff]  ;;  %v184_v12 = vpack.c.bf16 %v128_v5, %v124_v4  ;;  %v185_v13 = vpack.c.bf16 %v129_v7, %v125_v6  ;;  %v186_v14 = vpack.c.bf16 %v130_v9, %v126_v8  ;;  %v1668_v16 = vld [vmem:[#allocation10 + $0xa8] sm:$0xf]  ;;  %v1759_v18 = vld [vmem:[#allocation10 + $0xac] sm:$0xf] }
  0x34   :  { %538 = vmatpush.bf16.msra.mxu1 %v1716_v21  ;;  %v131_v11 = vld [vmem:[#allocation2 + $0x78] sm:$0xff]  ;;  %v1660_v21 = vld [vmem:[#allocation10 + $0xa0] sm:$0xf]  ;;  %v133_v30 = vld [vmem:[#allocation2 + $0x88] sm:$0xff] }
  0x35   :  { %587 = vmatpush.bf16.msra.mxu2 %v1724_v22  ;;  %v187_v15 = vpack.c.bf16 %v131_v11, %v127_v10  ;;  %v1761_v17 = vld [vmem:[#allocation10 + $0xb4] sm:$0xf0]  ;;  %v1670_v20 = vld [vmem:[#allocation10 + $0xb8] sm:$0xf0]  ;;  %v1760_v22 = vld [vmem:[#allocation10 + $0xac] sm:$0xf0] }
  0x36   :  { %636 = vmatpush.bf16.msra.mxu3 %v1732_v23  ;;  %v1669_v19 = vor.u32 %v1761_v17, %v1668_v16  ;;  %v1673_v23 = vor.u32 %v1759_v18, %v1670_v20  ;;  %v137_v31 = vld [vmem:[#allocation2 + $0xa8] sm:$0xff]  ;;  %v134_v32 = vld [vmem:[#allocation2 + $0x90] sm:$0xff]  ;;  %v1757_v41 = vld [vmem:[#allocation10 + $0x94] sm:$0xf0] }
  0x37   :  { %490 = vmatpush.bf16.msra.mxu0 %v1707_v24  ;;  %v1661_v24 = vor.u32 %v1760_v22, %v1660_v21  ;;  %v138_v33 = vld [vmem:[#allocation2 + $0xb0] sm:$0xff]  ;;  %v189_v37 = vpack.c.bf16 %v137_v31, %v133_v30  ;;  %v1652_v40 = vld [vmem:[#allocation10 + $0x88] sm:$0xf]  ;;  %v1755_v42 = vld [vmem:[#allocation10 + $0x8c] sm:$0xf] }
  0x38   :  { %539 = vmatpush.bf16.msra.mxu1 %v1715_v25  ;;  %v1758_v25 = vld [vmem:[#allocation10 + $0xa4] sm:$0xf]  ;;  %v190_v38 = vpack.c.bf16 %v138_v33, %v134_v32  ;;  %v1653_v43 = vor.u32 %v1757_v41, %v1652_v40  ;;  %v1654_v44 = vld [vmem:[#allocation10 + $0x98] sm:$0xf0]  ;;  %v142_v56 = vld [vmem:[#allocation2 + $0xd0] sm:$0xff] }
  0x39   :  { %588 = vmatpush.bf16.msra.mxu2 %v1723_v26  ;;  %v1662_v26 = vld [vmem:[#allocation10 + $0xb0] sm:$0xf0]  ;;  %v1657_v47 = vor.u32 %v1755_v42, %v1654_v44  ;;  %v1754_v49 = vld [vmem:[#allocation10 + $0x84] sm:$0xf]  ;;  %v143_v58 = vld [vmem:[#allocation2 + $0xd8] sm:$0xff] }
  0x3a   :  { %637 = vmatpush.bf16.msra.mxu3 %v1731_v27  ;;  %v1665_v27 = vor.u32 %v1758_v25, %v1662_v26  ;;  %v146_v57 = vld [vmem:[#allocation2 + $0xf0] sm:$0xff]  ;;  %v1753_v1 = vld [vmem:[#allocation10 + $0x74] sm:$0xf0]  ;;  %v1751_v2 = vld [vmem:[#allocation10 + $0x6c] sm:$0xf] }
  0x3b   :  { %491 = vmatpush.bf16.msra.mxu0 %v1706_v28  ;;  %v132_v28 = vld [vmem:[#allocation2 + $0x80] sm:$0xff]  ;;  %v194_v62 = vpack.c.bf16 %v146_v57, %v142_v56  ;;  %v1638_v4 = vld [vmem:[#allocation10 + $0x78] sm:$0xf0]  ;;  %v1752_v6 = vld [vmem:[#allocation10 + $0x6c] sm:$0xf0] }
  0x3c   :  { %540 = vmatpush.bf16.msra.mxu1 %v1714_v29  ;;  %v136_v29 = vld [vmem:[#allocation2 + $0xa0] sm:$0xff]  ;;  %v1641_v7 = vor.u32 %v1751_v2, %v1638_v4  ;;  %v1630_v10 = vld [vmem:[#allocation10 + $0x70] sm:$0xf0]  ;;  %v151_v18 = vld [vmem:[#allocation2 + $0x118] sm:$0xff] }
  0x3d   :  { %589 = vmatpush.bf16.msra.mxu2 %v1722_v34  ;;  %v135_v34 = vld [vmem:[#allocation2 + $0x98] sm:$0xff]  ;;  %v188_v36 = vpack.c.bf16 %v136_v29, %v132_v28  ;;  %v1628_v5 = vld [vmem:[#allocation10 + $0x60] sm:$0xf]  ;;  %v1750_v9 = vld [vmem:[#allocation10 + $0x64] sm:$0xf] }
  0x3e   :  { %638 = vmatpush.bf16.msra.mxu3 %v1730_v35  ;;  %492 = vmatmul.bf16.vlgmr.msra.gmra.mxu0 %v180_v50  ;;  %v139_v35 = vld [vmem:[#allocation2 + $0xb8] sm:$0xff]  ;;  %v1646_v50 = vld [vmem:[#allocation10 + $0x90] sm:$0xf0]  ;;  %v1629_v8 = vor.u32 %v1752_v6, %v1628_v5  ;;  %v1633_v11 = vor.u32 %v1750_v9, %v1630_v10  ;;  %v1747_v26 = vld [vmem:[#allocation10 + $0x4c] sm:$0xf] }
  0x3f   :  { %541 = vmatmul.bf16.vlgmr.msra.gmra.mxu1 %v181_v51  ;;  %890 = vmatpush.bf16.msrb.mxu0 %v1693_v54  ;;  %v191_v39 = vpack.c.bf16 %v139_v35, %v135_v34  ;;  %v1649_v51 = vor.u32 %v1754_v49, %v1646_v50  ;;  %v141_v54 = vld [vmem:[#allocation2 + $0xc8] sm:$0xff]  ;;  %v150_v16 = vld [vmem:[#allocation2 + $0x110] sm:$0xff]  ;;  %v1749_v25 = vld [vmem:[#allocation10 + $0x54] sm:$0xf0] }
  0x40   :  { %590 = vmatmul.bf16.vlgmr.msra.gmra.mxu2 %v182_v52  ;;  %939 = vmatpush.bf16.msrb.mxu1 %v1697_v55  ;;  %v140_v52 = vld [vmem:[#allocation2 + $0xc0] sm:$0xff]  ;;  %v145_v55 = vld [vmem:[#allocation2 + $0xe8] sm:$0xff]  ;;  %v154_v17 = vld [vmem:[#allocation2 + $0x130] sm:$0xff] }
  0x41   :  { %988 = vmatpush.bf16.msrb.mxu2 %v1701_v45  ;;  %639 = vmatmul.bf16.vlgmr.msra.gmra.mxu3 %v183_v53  ;;  %v1644_v45 = vld [vmem:[#allocation10 + $0x80] sm:$0xf]  ;;  %v193_v61 = vpack.c.bf16 %v145_v55, %v141_v54  ;;  %v198_v22 = vpack.c.bf16 %v154_v17, %v150_v16  ;;  %v1622_v28 = vld [vmem:[#allocation10 + $0x58] sm:$0xf0]  ;;  %v1748_v30 = vld [vmem:[#allocation10 + $0x4c] sm:$0xf0] }
  0x42   :  { %1037 = vmatpush.bf16.msrb.mxu3 %v1705_v46  ;;  %v1756_v46 = vld [vmem:[#allocation10 + $0x8c] sm:$0xf0]  ;;  %v144_v53 = vld [vmem:[#allocation2 + $0xe0] sm:$0xff]  ;;  %v1625_v31 = vor.u32 %v1747_v26, %v1622_v28  ;;  %v1614_v34 = vld [vmem:[#allocation10 + $0x50] sm:$0xf0] }
  0x43   :  { %891 = vmatpush.bf16.msrb.mxu0 %v1677_v0  ;;  %v1645_v48 = vor.u32 %v1756_v46, %v1644_v45  ;;  %v192_v60 = vpack.c.bf16 %v144_v53, %v140_v52  ;;  %v1636_v0 = vld [vmem:[#allocation10 + $0x68] sm:$0xf]  ;;  %v1612_v29 = vld [vmem:[#allocation10 + $0x40] sm:$0xf]  ;;  %v1746_v33 = vld [vmem:[#allocation10 + $0x44] sm:$0xf] }
  0x44   :  { %940 = vmatpush.bf16.msrb.mxu1 %v1681_v3  ;;  %v1637_v3 = vor.u32 %v1753_v1, %v1636_v0  ;;  %v1613_v32 = vor.u32 %v1748_v30, %v1612_v29  ;;  %v1617_v35 = vor.u32 %v1746_v33, %v1614_v34  ;;  %v158_v40 = vld [vmem:[#allocation2 + $0x150] sm:$0xff]  ;;  %v159_v42 = vld [vmem:[#allocation2 + $0x158] sm:$0xff]  ;;  %v1743_v50 = vld [vmem:[#allocation10 + $0x2c] sm:$0xf] }
  0x45   :  { %989 = vmatpush.bf16.msrb.mxu2 %v1685_v59  ;;  %v147_v59 = vld [vmem:[#allocation2 + $0xf8] sm:$0xff]  ;;  %v162_v41 = vld [vmem:[#allocation2 + $0x170] sm:$0xff]  ;;  %v1596_v53 = vld [vmem:[#allocation10 + $0x20] sm:$0xf] }
  0x46   :  { %1038 = vmatpush.bf16.msrb.mxu3 %v1689_v63  ;;  %v195_v63 = vpack.c.bf16 %v147_v59, %v143_v58  ;;  %v202_v46 = vpack.c.bf16 %v162_v41, %v158_v40  ;;  %v1745_v49 = vld [vmem:[#allocation10 + $0x34] sm:$0xf0]  ;;  %v1606_v52 = vld [vmem:[#allocation10 + $0x38] sm:$0xf0]  ;;  %v1744_v54 = vld [vmem:[#allocation10 + $0x2c] sm:$0xf0] }
  0x47   :  { %892 = vmatpush.bf16.msrb.mxu0 %v1661_v24  ;;  %v1620_v24 = vld [vmem:[#allocation10 + $0x48] sm:$0xf]  ;;  %v1609_v55 = vor.u32 %v1743_v50, %v1606_v52  ;;  %v1597_v56 = vor.u32 %v1744_v54, %v1596_v53  ;;  %v1742_v57 = vld [vmem:[#allocation10 + $0x24] sm:$0xf]  ;;  %v1598_v58 = vld [vmem:[#allocation10 + $0x30] sm:$0xf0] }
  0x48   :  { %941 = vmatpush.bf16.msrb.mxu1 %v1665_v27  ;;  %v1621_v27 = vor.u32 %v1749_v25, %v1620_v24  ;;  %v1601_v59 = vor.u32 %v1742_v57, %v1598_v58  ;;  %v166_v0 = vld [vmem:[#allocation2 + $0x190] sm:$0xff]  ;;  %v167_v2 = vld [vmem:[#allocation2 + $0x198] sm:$0xff]  ;;  %v1739_v10 = vld [vmem:[#allocation10 + $0xc] sm:$0xf] }
  0x49   :  { %990 = vmatpush.bf16.msrb.mxu2 %v1669_v19  ;;  %v155_v19 = vld [vmem:[#allocation2 + $0x138] sm:$0xff]  ;;  %v170_v1 = vld [vmem:[#allocation2 + $0x1b0] sm:$0xff]  ;;  %v173_v16 = vld [vmem:[#allocation2 + $0x1c8] sm:$0xff] }
  0x4a   :  { %1039 = vmatpush.bf16.msrb.mxu3 %v1673_v23  ;;  %v199_v23 = vpack.c.bf16 %v155_v19, %v151_v18  ;;  %v206_v6 = vpack.c.bf16 %v170_v1, %v166_v0  ;;  %v1741_v9 = vld [vmem:[#allocation10 + $0x14] sm:$0xf0]  ;;  %v1580_v17 = vld [vmem:[#allocation10] sm:$0xf]  ;;  %v1740_v18 = vld [vmem:[#allocation10 + $0xc] sm:$0xf0] }
  0x4b   :  { %893 = vmatpush.bf16.msrb.mxu0 %v1645_v48  ;;  %v1604_v48 = vld [vmem:[#allocation10 + $0x28] sm:$0xf]  ;;  %v1738_v19 = vld [vmem:[#allocation10 + $0x4] sm:$0xf]  ;;  %v178_v24 = vld [vmem:[#allocation2 + $0x1f0] sm:$0xff] }
  0x4c   :  { %942 = vmatpush.bf16.msrb.mxu1 %v1649_v51  ;;  %v1605_v51 = vor.u32 %v1745_v49, %v1604_v48  ;;  %v175_v25 = vld [vmem:[#allocation2 + $0x1d8] sm:$0xff]  ;;  %v276_v34 = vld [vmem:[#allocation5] sm:$0xff]  ;;  %v278_v52 = vld [vmem:[#allocation5 + $0x10] sm:$0xff] }
  0x4d   :  { %991 = vmatpush.bf16.msrb.mxu2 %v1653_v43  ;;  %v163_v43 = vld [vmem:[#allocation2 + $0x178] sm:$0xff] }
  0x4e   :  { %497 = vmatmul.bf16.gmra.mxu0 %v184_v12  ;;  %1040 = vmatpush.bf16.msrb.mxu3 %v1657_v47  ;;  %v148_v12 = vld [vmem:[#allocation2 + $0x100] sm:$0xff]  ;;  %v203_v47 = vpack.c.bf16 %v163_v43, %v159_v42  ;;  %v179_v26 = vld [vmem:[#allocation2 + $0x1f8] sm:$0xff] }
  0x4f   :  { %546 = vmatmul.bf16.gmra.mxu1 %v185_v13  ;;  %894 = vmatpush.bf16.msrb.mxu0 %v1629_v8  ;;  %v152_v13 = vld [vmem:[#allocation2 + $0x120] sm:$0xff]  ;;  %v1588_v8 = vld [vmem:[#allocation10 + $0x8] sm:$0xf]  ;;  %v279_v57 = vld [vmem:[#allocation5 + $0x18] sm:$0xff] }
  0x50   :  { %595 = vmatmul.bf16.gmra.mxu2 %v186_v14  ;;  %943 = vmatpush.bf16.msrb.mxu1 %v1633_v11  ;;  %v149_v14 = vld [vmem:[#allocation2 + $0x108] sm:$0xff]  ;;  %v196_v20 = vpack.c.bf16 %v152_v13, %v148_v12  ;;  %v1589_v11 = vor.u32 %v1741_v9, %v1588_v8  ;;  %v1590_v12 = vld [vmem:[#allocation10 + $0x18] sm:$0xf0] }
  0x51   :  { %644 = vmatmul.bf16.gmra.mxu3 %v187_v15  ;;  %992 = vmatpush.bf16.msrb.mxu2 %v1637_v3  ;;  %v153_v15 = vld [vmem:[#allocation2 + $0x128] sm:$0xff]  ;;  %v171_v3 = vld [vmem:[#allocation2 + $0x1b8] sm:$0xff]  ;;  %v1593_v13 = vor.u32 %v1739_v10, %v1590_v12 }
  0x52   :  { %1041 = vmatpush.bf16.msrb.mxu3 %v1641_v7  ;;  %v197_v21 = vpack.c.bf16 %v153_v15, %v149_v14  ;;  %v207_v7 = vpack.c.bf16 %v171_v3, %v167_v2  ;;  %v172_v14 = vld [vmem:[#allocation2 + $0x1c0] sm:$0xff]  ;;  %v281_v12 = vld [vmem:[#allocation5 + $0x28] sm:$0xff] }
  0x53   :  { %895 = vmatpush.bf16.msrb.mxu0 %v1613_v32  ;;  %v176_v15 = vld [vmem:[#allocation2 + $0x1e0] sm:$0xff] }
  0x54   :  { %944 = vmatpush.bf16.msrb.mxu1 %v1617_v35  ;;  %v208_v28 = vpack.c.bf16 %v176_v15, %v172_v14 }
  0x55   :  { %993 = vmatpush.bf16.msrb.mxu2 %v1621_v27 }
  0x56   :  { %1042 = vmatpush.bf16.msrb.mxu3 %v1625_v31  ;;  %v211_v31 = vpack.c.bf16 %v179_v26, %v175_v25  ;;  %v282_v26 = vld [vmem:[#allocation5 + $0x30] sm:$0xff] }
  0x57   :  { %896 = vmatpush.bf16.msrb.mxu0 %v1597_v56 }
  0x58   :  { %945 = vmatpush.bf16.msrb.mxu1 %v1601_v59 }
  0x59   :  { %994 = vmatpush.bf16.msrb.mxu2 %v1605_v51 }
  0x5a   :  { %1043 = vmatpush.bf16.msrb.mxu3 %v1609_v55 }
  0x5d   :  { %995 = vmatpush.bf16.msrb.mxu2 %v1589_v11 }
  0x5e   :  { %502 = vmatmul.bf16.gmra.mxu0 %v188_v36  ;;  %v156_v36 = vld [vmem:[#allocation2 + $0x140] sm:$0xff]  ;;  %1044 = vmatpush.bf16.msrb.mxu3 %v1593_v13 }
  0x5f   :  { %551 = vmatmul.bf16.gmra.mxu1 %v189_v37  ;;  %v160_v37 = vld [vmem:[#allocation2 + $0x160] sm:$0xff] }
  0x60   :  { %600 = vmatmul.bf16.gmra.mxu2 %v190_v38  ;;  %v157_v38 = vld [vmem:[#allocation2 + $0x148] sm:$0xff]  ;;  %v200_v44 = vpack.c.bf16 %v160_v37, %v156_v36 }
  0x61   :  { %649 = vmatmul.bf16.gmra.mxu3 %v191_v39  ;;  %v161_v39 = vld [vmem:[#allocation2 + $0x168] sm:$0xff] }
  0x62   :  { %v201_v45 = vpack.c.bf16 %v161_v39, %v157_v38  ;;  %v277_v38 = vld [vmem:[#allocation5 + $0x8] sm:$0xff] }
  0x6e   :  { %507 = vmatmul.bf16.gmra.mxu0 %v192_v60  ;;  %v164_v60 = vld [vmem:[#allocation2 + $0x180] sm:$0xff] }
  0x6f   :  { %556 = vmatmul.bf16.gmra.mxu1 %v193_v61  ;;  %v168_v61 = vld [vmem:[#allocation2 + $0x1a0] sm:$0xff] }
  0x70   :  { %605 = vmatmul.bf16.gmra.mxu2 %v194_v62  ;;  %v165_v62 = vld [vmem:[#allocation2 + $0x188] sm:$0xff]  ;;  %v204_v4 = vpack.c.bf16 %v168_v61, %v164_v60 }
  0x71   :  { %654 = vmatmul.bf16.gmra.mxu3 %v195_v63  ;;  %v169_v63 = vld [vmem:[#allocation2 + $0x1a8] sm:$0xff] }
  0x72   :  { %v205_v5 = vpack.c.bf16 %v169_v63, %v165_v62 }
  0x7e   :  { %512 = vmatmul.bf16.gmra.mxu0 %v196_v20  ;;  %v177_v20 = vld [vmem:[#allocation2 + $0x1e8] sm:$0xff] }
  0x7f   :  { %561 = vmatmul.bf16.gmra.mxu1 %v197_v21  ;;  %v174_v21 = vld [vmem:[#allocation2 + $0x1d0] sm:$0xff]  ;;  %v209_v29 = vpack.c.bf16 %v177_v20, %v173_v16 }
  0x80   :  { %610 = vmatmul.bf16.gmra.mxu2 %v198_v22  ;;  %v1581_v22 = vor.u32 %v1740_v18, %v1580_v17  ;;  %v210_v30 = vpack.c.bf16 %v178_v24, %v174_v21 }
  0x81   :  { %659 = vmatmul.bf16.gmra.mxu3 %v199_v23  ;;  %v1582_v23 = vld [vmem:[#allocation10 + $0x10] sm:$0xf0] }
  0x82   :  { %v1585_v27 = vor.u32 %v1738_v19, %v1582_v23  ;;  %897 = vmatpush.bf16.msrb.mxu0 %v1581_v22 }
  0x84   :  { %946 = vmatpush.bf16.msrb.mxu1 %v1585_v27 }
  0x8e   :  { %517 = vmatmul.bf16.gmra.mxu0 %v200_v44 }
  0x8f   :  { %566 = vmatmul.bf16.gmra.mxu1 %v201_v45 }
  0x90   :  { %615 = vmatmul.bf16.gmra.mxu2 %v202_v46 }
  0x91   :  { %664 = vmatmul.bf16.gmra.mxu3 %v203_v47 }
  0x9e   :  { %522 = vmatmul.bf16.gmra.mxu0 %v204_v4 }
  0x9f   :  { %571 = vmatmul.bf16.gmra.mxu1 %v205_v5 }
  0xa0   :  { %620 = vmatmul.bf16.gmra.mxu2 %v206_v6 }
  0xa1   :  { %669 = vmatmul.bf16.gmra.mxu3 %v207_v7  ;;  %v280_v7 = vld [vmem:[#allocation5 + $0x20] sm:$0xff] }
  0xae   :  { %527 = vmatmul.bf16.gmra.mxu0 %v208_v28 }
  0xaf   :  { %576 = vmatmul.bf16.gmra.mxu1 %v209_v29 }
  0xb0   :  { %625 = vmatmul.bf16.gmra.mxu2 %v210_v30 }
  0xb1   :  { %674 = vmatmul.bf16.gmra.mxu3 %v211_v31  ;;  %v283_v31 = vld [vmem:[#allocation5 + $0x38] sm:$0xff] }
  0xbb   :  { %v493_v32 = vpop.f32.mrf.mxu0 }
  0xbc   :  { %v542_v33 = vpop.f32.mrf.mxu1  ;;  %v494_v35 = vadd.f32 %v493_v32, %v276_v34 }
  0xbe   :  { %v543_v41 = vadd.f32 %v542_v33, %v494_v35 }
  0xc3   :  { %v591_v36 = vpop.f32.mrf.mxu2  ;;  %v495_v39 = vpop.f32.mrf.mxu0 }
  0xc4   :  { %v640_v37 = vpop.f32.mrf.mxu3  ;;  %v544_v40 = vpop.f32.mrf.mxu1  ;;  %v496_v42 = vadd.f32 %v495_v39, %v277_v38  ;;  %v592_v43 = vadd.f32 %v591_v36, %v543_v41 }
  0xc6   :  { %v545_v44 = vadd.f32 %v544_v40, %v496_v42  ;;  %v641_v50 = vadd.f32 %v640_v37, %v592_v43 }
  0xcb   :  { %v593_v45 = vpop.f32.mrf.mxu2  ;;  %v498_v48 = vpop.f32.mrf.mxu0 }
  0xcc   :  { %v642_v46 = vpop.f32.mrf.mxu3  ;;  %v594_v47 = vadd.f32 %v593_v45, %v545_v44  ;;  %v547_v49 = vpop.f32.mrf.mxu1  ;;  %v499_v54 = vadd.f32 %v498_v48, %v278_v52  ;;  %v284_v45 = vld [vmem:[#allocation5 + $0x40] sm:$0xff] }
  0xce   :  { %v643_v51 = vadd.f32 %v642_v46, %v594_v47  ;;  %v548_v60 = vadd.f32 %v547_v49, %v499_v54 }
  0xd0   :  { %v680_v53 = vpack.c.bf16 %v643_v51, %v641_v50  ;;  %v285_v50 = vld [vmem:[#allocation5 + $0x48] sm:$0xff] }
  0xd2   :  { %898 = vmatmul.bf16.vlgmr.msrb.gmra.mxu0 %v680_v53  ;;  %947 = vmatmul.bf16.vlgmr.msrb.gmra.mxu1 %v680_v53 }
  0xd3   :  { %996 = vmatmul.bf16.vlgmr.msrb.gmra.mxu2 %v680_v53  ;;  %1045 = vmatmul.bf16.vlgmr.msrb.gmra.mxu3 %v680_v53  ;;  %v596_v55 = vpop.f32.mrf.mxu2  ;;  %v500_v58 = vpop.f32.mrf.mxu0 }
  0xd4   :  { %v645_v56 = vpop.f32.mrf.mxu3  ;;  %v549_v59 = vpop.f32.mrf.mxu1  ;;  %v501_v61 = vadd.f32 %v500_v58, %v279_v57  ;;  %v597_v62 = vadd.f32 %v596_v55, %v548_v60 }
  0xd6   :  { %v550_v63 = vadd.f32 %v549_v59, %v501_v61  ;;  %v646_v5 = vadd.f32 %v645_v56, %v597_v62 }
  0xdb   :  { %v598_v0 = vpop.f32.mrf.mxu2  ;;  %v503_v3 = vpop.f32.mrf.mxu0 }
  0xdc   :  { %v647_v1 = vpop.f32.mrf.mxu3  ;;  %v599_v2 = vadd.f32 %v598_v0, %v550_v63  ;;  %v552_v4 = vpop.f32.mrf.mxu1  ;;  %v504_v9 = vadd.f32 %v503_v3, %v280_v7  ;;  %v286_v0 = vld [vmem:[#allocation5 + $0x50] sm:$0xff] }
  0xde   :  { %v648_v6 = vadd.f32 %v647_v1, %v599_v2  ;;  %v553_v15 = vadd.f32 %v552_v4, %v504_v9 }
  0xe0   :  { %v681_v8 = vpack.c.bf16 %v648_v6, %v646_v5  ;;  %v287_v5 = vld [vmem:[#allocation5 + $0x58] sm:$0xff] }
  0xe2   :  { %903 = vmatmul.bf16.gmra.mxu0 %v681_v8  ;;  %952 = vmatmul.bf16.gmra.mxu1 %v681_v8 }
  0xe3   :  { %1001 = vmatmul.bf16.gmra.mxu2 %v681_v8  ;;  %1050 = vmatmul.bf16.gmra.mxu3 %v681_v8  ;;  %v601_v10 = vpop.f32.mrf.mxu2  ;;  %v505_v13 = vpop.f32.mrf.mxu0 }
  0xe4   :  { %v650_v11 = vpop.f32.mrf.mxu3  ;;  %v554_v14 = vpop.f32.mrf.mxu1  ;;  %v506_v16 = vadd.f32 %v505_v13, %v281_v12  ;;  %v602_v17 = vadd.f32 %v601_v10, %v553_v15 }
  0xe6   :  { %v555_v18 = vadd.f32 %v554_v14, %v506_v16  ;;  %v651_v24 = vadd.f32 %v650_v11, %v602_v17 }
  0xeb   :  { %v603_v19 = vpop.f32.mrf.mxu2  ;;  %v508_v22 = vpop.f32.mrf.mxu0 }
  0xec   :  { %v652_v20 = vpop.f32.mrf.mxu3  ;;  %v604_v21 = vadd.f32 %v603_v19, %v555_v18  ;;  %v557_v23 = vpop.f32.mrf.mxu1  ;;  %v509_v28 = vadd.f32 %v508_v22, %v282_v26  ;;  %v288_v19 = vld [vmem:[#allocation5 + $0x60] sm:$0xff] }
  0xee   :  { %v653_v25 = vadd.f32 %v652_v20, %v604_v21  ;;  %v558_v34 = vadd.f32 %v557_v23, %v509_v28 }
  0xf0   :  { %v682_v27 = vpack.c.bf16 %v653_v25, %v651_v24  ;;  %v289_v24 = vld [vmem:[#allocation5 + $0x68] sm:$0xff] }
  0xf2   :  { %908 = vmatmul.bf16.gmra.mxu0 %v682_v27  ;;  %957 = vmatmul.bf16.gmra.mxu1 %v682_v27 }
  0xf3   :  { %1006 = vmatmul.bf16.gmra.mxu2 %v682_v27  ;;  %1055 = vmatmul.bf16.gmra.mxu3 %v682_v27  ;;  %v606_v29 = vpop.f32.mrf.mxu2  ;;  %v510_v32 = vpop.f32.mrf.mxu0 }
  0xf4   :  { %v655_v30 = vpop.f32.mrf.mxu3  ;;  %v559_v33 = vpop.f32.mrf.mxu1  ;;  %v511_v35 = vadd.f32 %v510_v32, %v283_v31  ;;  %v607_v36 = vadd.f32 %v606_v29, %v558_v34 }
  0xf6   :  { %v560_v37 = vadd.f32 %v559_v33, %v511_v35  ;;  %v656_v43 = vadd.f32 %v655_v30, %v607_v36 }
  0xfb   :  { %v608_v38 = vpop.f32.mrf.mxu2  ;;  %v513_v41 = vpop.f32.mrf.mxu0 }
  0xfc   :  { %v657_v39 = vpop.f32.mrf.mxu3  ;;  %v609_v40 = vadd.f32 %v608_v38, %v560_v37  ;;  %v562_v42 = vpop.f32.mrf.mxu1  ;;  %v514_v47 = vadd.f32 %v513_v41, %v284_v45  ;;  %v290_v37 = vld [vmem:[#allocation5 + $0x70] sm:$0xff] }
  0xfe   :  { %v658_v44 = vadd.f32 %v657_v39, %v609_v40  ;;  %v563_v53 = vadd.f32 %v562_v42, %v514_v47 }
 0x100   :  { %v683_v46 = vpack.c.bf16 %v658_v44, %v656_v43  ;;  %v291_v43 = vld [vmem:[#allocation5 + $0x78] sm:$0xff] }
 0x102   :  { %913 = vmatmul.bf16.gmra.mxu0 %v683_v46  ;;  %962 = vmatmul.bf16.gmra.mxu1 %v683_v46 }
 0x103   :  { %1011 = vmatmul.bf16.gmra.mxu2 %v683_v46  ;;  %1060 = vmatmul.bf16.gmra.mxu3 %v683_v46  ;;  %v611_v48 = vpop.f32.mrf.mxu2  ;;  %v515_v51 = vpop.f32.mrf.mxu0 }
 0x104   :  { %v660_v49 = vpop.f32.mrf.mxu3  ;;  %v564_v52 = vpop.f32.mrf.mxu1  ;;  %v516_v54 = vadd.f32 %v515_v51, %v285_v50  ;;  %v612_v55 = vadd.f32 %v611_v48, %v563_v53 }
 0x106   :  { %v565_v56 = vadd.f32 %v564_v52, %v516_v54  ;;  %v661_v62 = vadd.f32 %v660_v49, %v612_v55 }
 0x10b   :  { %v613_v57 = vpop.f32.mrf.mxu2  ;;  %v518_v60 = vpop.f32.mrf.mxu0 }
 0x10c   :  { %v662_v58 = vpop.f32.mrf.mxu3  ;;  %v614_v59 = vadd.f32 %v613_v57, %v565_v56  ;;  %v567_v61 = vpop.f32.mrf.mxu1  ;;  %v519_v2 = vadd.f32 %v518_v60, %v286_v0  ;;  %v720_v56 = vld [vmem:[#allocation11] ss:$4 sm:$0xf] }
 0x10d   :  { %v2037_v57 = vperm.slane %v720_v56, 0  ;;  %v1087_v0 = vld [vmem:[#allocation7 + $0x8] sm:$0xff] }
 0x10e   :  { %v663_v63 = vadd.f32 %v662_v58, %v614_v59  ;;  %v568_v8 = vadd.f32 %v567_v61, %v519_v2  ;;  %v2039_v58 = vperm.slane %v720_v56, 1  ;;  %v1215_v59 = vld [vmem:[#allocation11 + $0x1] ss:$4 sm:$0xf] }
 0x10f   :  { %v1086_v61 = vld [vmem:[#allocation7] sm:$0xff]  ;;  %v2042_v2 = vperm.slane %v1215_v59, 0 }
 0x110   :  { %v684_v1 = vpack.c.bf16 %v663_v63, %v661_v62  ;;  %v1290_v62 = vld [vmem:[#allocation11 + $0x2] ss:$4 sm:$0xf] }
 0x112   :  { %918 = vmatmul.bf16.gmra.mxu0 %v684_v1  ;;  %967 = vmatmul.bf16.gmra.mxu1 %v684_v1 }
 0x113   :  { %1016 = vmatmul.bf16.gmra.mxu2 %v684_v1  ;;  %1065 = vmatmul.bf16.gmra.mxu3 %v684_v1  ;;  %v616_v3 = vpop.f32.mrf.mxu2  ;;  %v520_v6 = vpop.f32.mrf.mxu0 }
 0x114   :  { %v665_v4 = vpop.f32.mrf.mxu3  ;;  %v569_v7 = vpop.f32.mrf.mxu1  ;;  %v521_v9 = vadd.f32 %v520_v6, %v287_v5  ;;  %v617_v10 = vadd.f32 %v616_v3, %v568_v8  ;;  %v2047_v6 = vperm.slane %v1290_v62, 0  ;;  %v2049_v8 = vperm.slane %v1290_v62, 1 }
 0x116   :  { %v570_v11 = vadd.f32 %v569_v7, %v521_v9  ;;  %v666_v17 = vadd.f32 %v665_v4, %v617_v10  ;;  %v2045_v4 = vperm.slane %v1215_v59, 1  ;;  %v2051_v9 = vperm.slane %v720_v56, 2 }
 0x117   :  { %v2053_v10 = vperm.slane %v720_v56, 3 }
 0x11b   :  { %v618_v12 = vpop.f32.mrf.mxu2  ;;  %v523_v15 = vpop.f32.mrf.mxu0 }
 0x11c   :  { %v667_v13 = vpop.f32.mrf.mxu3  ;;  %v619_v14 = vadd.f32 %v618_v12, %v570_v11  ;;  %v572_v16 = vpop.f32.mrf.mxu1  ;;  %v524_v21 = vadd.f32 %v523_v15, %v288_v19 }
 0x11e   :  { %v668_v18 = vadd.f32 %v667_v13, %v619_v14  ;;  %v573_v27 = vadd.f32 %v572_v16, %v524_v21  ;;  %v1088_v16 = vld [vmem:[#allocation7 + $0x10] sm:$0xff] }
 0x120   :  { %v685_v20 = vpack.c.bf16 %v668_v18, %v666_v17  ;;  %v1089_v18 = vld [vmem:[#allocation7 + $0x18] sm:$0xff] }
 0x122   :  { %923 = vmatmul.bf16.gmra.mxu0 %v685_v20  ;;  %972 = vmatmul.bf16.gmra.mxu1 %v685_v20 }
 0x123   :  { %1021 = vmatmul.bf16.gmra.mxu2 %v685_v20  ;;  %1070 = vmatmul.bf16.gmra.mxu3 %v685_v20  ;;  %v621_v22 = vpop.f32.mrf.mxu2  ;;  %v525_v25 = vpop.f32.mrf.mxu0  ;;  %v2060_v20 = vperm.slane %v1215_v59, 2 }
 0x124   :  { %v670_v23 = vpop.f32.mrf.mxu3  ;;  %v574_v26 = vpop.f32.mrf.mxu1  ;;  %v526_v28 = vadd.f32 %v525_v25, %v289_v24  ;;  %v622_v29 = vadd.f32 %v621_v22, %v573_v27  ;;  %v2063_v22 = vperm.slane %v1215_v59, 3  ;;  %v1090_v24 = vld [vmem:[#allocation7 + $0x20] sm:$0xff] }
 0x126   :  { %v575_v30 = vadd.f32 %v574_v26, %v526_v28  ;;  %v671_v35 = vadd.f32 %v670_v23, %v622_v29  ;;  %v1091_v26 = vld [vmem:[#allocation7 + $0x28] sm:$0xff] }
 0x12b   :  { %v623_v31 = vpop.f32.mrf.mxu2  ;;  %v528_v34 = vpop.f32.mrf.mxu0 }
 0x12c   :  { %v672_v32 = vpop.f32.mrf.mxu3  ;;  %v624_v33 = vadd.f32 %v623_v31, %v575_v30  ;;  %v577_v38 = vpop.f32.mrf.mxu1  ;;  %v529_v40 = vadd.f32 %v528_v34, %v290_v37  ;;  %v2067_v30 = vperm.slane %v1290_v62, 2 }
 0x12e   :  { %v673_v36 = vadd.f32 %v672_v32, %v624_v33  ;;  %v578_v45 = vadd.f32 %v577_v38, %v529_v40  ;;  %v2069_v32 = vperm.slane %v1290_v62, 3 }
 0x130   :  { %v686_v39 = vpack.c.bf16 %v673_v36, %v671_v35 }
 0x132   :  { %928 = vmatmul.bf16.gmra.mxu0 %v686_v39  ;;  %977 = vmatmul.bf16.gmra.mxu1 %v686_v39 }
 0x133   :  { %1026 = vmatmul.bf16.gmra.mxu2 %v686_v39  ;;  %1075 = vmatmul.bf16.gmra.mxu3 %v686_v39  ;;  %v626_v41 = vpop.f32.mrf.mxu2  ;;  %v530_v44 = vpop.f32.mrf.mxu0 }
 0x134   :  { %v675_v42 = vpop.f32.mrf.mxu3  ;;  %v531_v46 = vadd.f32 %v530_v44, %v291_v43  ;;  %v579_v47 = vpop.f32.mrf.mxu1  ;;  %v627_v48 = vadd.f32 %v626_v41, %v578_v45  ;;  %v1092_v44 = vld [vmem:[#allocation7 + $0x30] sm:$0xff] }
 0x136   :  { %v580_v49 = vadd.f32 %v579_v47, %v531_v46  ;;  %v676_v53 = vadd.f32 %v675_v42, %v627_v48  ;;  %v1093_v46 = vld [vmem:[#allocation7 + $0x38] sm:$0xff] }
 0x13b   :  { %v628_v50 = vpop.f32.mrf.mxu2 }
 0x13c   :  { %v629_v51 = vadd.f32 %v628_v50, %v580_v49  ;;  %v677_v52 = vpop.f32.mrf.mxu3  ;;  %v1094_v50 = vld [vmem:[#allocation7 + $0x40] sm:$0xff] }
 0x13e   :  { %v678_v54 = vadd.f32 %v677_v52, %v629_v51  ;;  %v1095_v52 = vld [vmem:[#allocation7 + $0x48] sm:$0xff] }
 0x140   :  { %v687_v55 = vpack.c.bf16 %v678_v54, %v676_v53 }
 0x142   :  { %933 = vmatmul.bf16.gmra.mxu0 %v687_v55  ;;  %982 = vmatmul.bf16.gmra.mxu1 %v687_v55 }
 0x143   :  { %1031 = vmatmul.bf16.gmra.mxu2 %v687_v55  ;;  %1080 = vmatmul.bf16.gmra.mxu3 %v687_v55 }
 0x14f   :  { %v899_v60 = vpop.f32.mrf.mxu0  ;;  %v948_v63 = vpop.f32.mrf.mxu1 }
 0x150   :  { %v900_v1 = vadd.f32 %v899_v60, %v2037_v57  ;;  %v949_v3 = vadd.f32 %v948_v63, %v2039_v58 }
 0x152   :  { %v1150_v5 = vadd.f32 %v1086_v61, %v900_v1  ;;  %v1151_v7 = vadd.f32 %v1087_v0, %v949_v3 }
 0x154   :  { %v1225_v11 = vmul.f32 %v2042_v2, %v1150_v5  ;;  %v1226_v12 = vmul.f32 %v2045_v4, %v1151_v7 }
 0x156   :  { %v1300_v13 = vadd.f32 %v2047_v6, %v1225_v11  ;;  %v1301_v14 = vadd.f32 %v2049_v8, %v1226_v12  ;;  %v997_v15 = vpop.f32.mrf.mxu2  ;;  %v1046_v17 = vpop.f32.mrf.mxu3  ;;  %v1096_v12 = vld [vmem:[#allocation7 + $0x50] sm:$0xff] }
 0x157   :  { %v998_v19 = vadd.f32 %v997_v15, %v2051_v9  ;;  %v1047_v21 = vadd.f32 %v1046_v17, %v2053_v10  ;;  %v901_v23 = vpop.f32.mrf.mxu0  ;;  %v950_v25 = vpop.f32.mrf.mxu1 }
 0x158   :  { %1364 = vst [vmem:[#allocation13] sm:$0xff] %v1300_v13  ;;  %v902_v27 = vadd.f32 %v901_v23, %v2037_v57  ;;  %v951_v28 = vadd.f32 %v950_v25, %v2039_v58 }
 0x159   :  { %1365 = vst [vmem:[#allocation13 + $0x8] sm:$0xff] %v1301_v14  ;;  %v1152_v29 = vadd.f32 %v1088_v16, %v998_v19  ;;  %v1153_v31 = vadd.f32 %v1089_v18, %v1047_v21  ;;  %v1097_v14 = vld [vmem:[#allocation7 + $0x58] sm:$0xff]  ;;  %v1098_v18 = vld [vmem:[#allocation7 + $0x60] sm:$0xff]  ;;  %v1099_v21 = vld [vmem:[#allocation7 + $0x68] sm:$0xff] }
 0x15a   :  { %v1154_v33 = vadd.f32 %v1090_v24, %v902_v27  ;;  %v1155_v34 = vadd.f32 %v1091_v26, %v951_v28 }
 0x15b   :  { %v1227_v35 = vmul.f32 %v2060_v20, %v1152_v29  ;;  %v1228_v36 = vmul.f32 %v2063_v22, %v1153_v31 }
 0x15c   :  { %v1229_v37 = vmul.f32 %v2042_v2, %v1154_v33  ;;  %v1230_v38 = vmul.f32 %v2045_v4, %v1155_v34 }
 0x15d   :  { %v1302_v39 = vadd.f32 %v2067_v30, %v1227_v35  ;;  %v1303_v40 = vadd.f32 %v2069_v32, %v1228_v36 }
 0x15e   :  { %v1304_v41 = vadd.f32 %v2047_v6, %v1229_v37  ;;  %v1305_v42 = vadd.f32 %v2049_v8, %v1230_v38  ;;  %v999_v43 = vpop.f32.mrf.mxu2  ;;  %v1048_v45 = vpop.f32.mrf.mxu3 }
 0x15f   :  { %1366 = vst [vmem:[#allocation13 + $0x10] sm:$0xff] %v1302_v39  ;;  %v1000_v47 = vadd.f32 %v999_v43, %v2051_v9  ;;  %v1049_v48 = vadd.f32 %v1048_v45, %v2053_v10  ;;  %v904_v49 = vpop.f32.mrf.mxu0  ;;  %v953_v51 = vpop.f32.mrf.mxu1 }
 0x160   :  { %1367 = vst [vmem:[#allocation13 + $0x18] sm:$0xff] %v1303_v40  ;;  %v905_v53 = vadd.f32 %v904_v49, %v2037_v57  ;;  %v954_v54 = vadd.f32 %v953_v51, %v2039_v58  ;;  %v1100_v40 = vld [vmem:[#allocation7 + $0x70] sm:$0xff] }
 0x161   :  { %1368 = vst [vmem:[#allocation13 + $0x20] sm:$0xff] %v1304_v41  ;;  %v1156_v55 = vadd.f32 %v1092_v44, %v1000_v47  ;;  %v1157_v56 = vadd.f32 %v1093_v46, %v1049_v48  ;;  %v1102_v46 = vld [vmem:[#allocation7 + $0x80] sm:$0xff]  ;;  %v1103_v48 = vld [vmem:[#allocation7 + $0x88] sm:$0xff] }
 0x162   :  { %1369 = vst [vmem:[#allocation13 + $0x28] sm:$0xff] %v1305_v42  ;;  %v1158_v59 = vadd.f32 %v1094_v50, %v905_v53  ;;  %v1159_v60 = vadd.f32 %v1095_v52, %v954_v54  ;;  %v1101_v42 = vld [vmem:[#allocation7 + $0x78] sm:$0xff] }
 0x163   :  { %v1231_v61 = vmul.f32 %v2060_v20, %v1156_v55  ;;  %v1232_v62 = vmul.f32 %v2063_v22, %v1157_v56 }
 0x164   :  { %v1233_v63 = vmul.f32 %v2042_v2, %v1158_v59  ;;  %v1234_v0 = vmul.f32 %v2045_v4, %v1159_v60 }
 0x165   :  { %v1306_v1 = vadd.f32 %v2067_v30, %v1231_v61  ;;  %v1307_v3 = vadd.f32 %v2069_v32, %v1232_v62 }
 0x166   :  { %v1308_v5 = vadd.f32 %v2047_v6, %v1233_v63  ;;  %v1309_v7 = vadd.f32 %v2049_v8, %v1234_v0  ;;  %v1002_v11 = vpop.f32.mrf.mxu2  ;;  %v1051_v13 = vpop.f32.mrf.mxu3 }
 0x167   :  { %1370 = vst [vmem:[#allocation13 + $0x30] sm:$0xff] %v1306_v1  ;;  %v1003_v15 = vadd.f32 %v1002_v11, %v2051_v9  ;;  %v1052_v16 = vadd.f32 %v1051_v13, %v2053_v10  ;;  %v906_v17 = vpop.f32.mrf.mxu0  ;;  %v955_v19 = vpop.f32.mrf.mxu1 }
 0x168   :  { %1371 = vst [vmem:[#allocation13 + $0x38] sm:$0xff] %v1307_v3  ;;  %v907_v23 = vadd.f32 %v906_v17, %v2037_v57  ;;  %v956_v24 = vadd.f32 %v955_v19, %v2039_v58  ;;  %v1104_v3 = vld [vmem:[#allocation7 + $0x90] sm:$0xff] }
 0x169   :  { %1372 = vst [vmem:[#allocation13 + $0x40] sm:$0xff] %v1308_v5  ;;  %v1160_v25 = vadd.f32 %v1096_v12, %v1003_v15  ;;  %v1161_v26 = vadd.f32 %v1097_v14, %v1052_v16  ;;  %v1106_v14 = vld [vmem:[#allocation7 + $0xa0] sm:$0xff]  ;;  %v1107_v16 = vld [vmem:[#allocation7 + $0xa8] sm:$0xff] }
 0x16a   :  { %1373 = vst [vmem:[#allocation13 + $0x48] sm:$0xff] %v1309_v7  ;;  %v1162_v27 = vadd.f32 %v1098_v18, %v907_v23  ;;  %v1163_v28 = vadd.f32 %v1099_v21, %v956_v24  ;;  %v1105_v7 = vld [vmem:[#allocation7 + $0x98] sm:$0xff] }
 0x16b   :  { %v1235_v29 = vmul.f32 %v2060_v20, %v1160_v25  ;;  %v1236_v31 = vmul.f32 %v2063_v22, %v1161_v26 }
 0x16c   :  { %v1237_v33 = vmul.f32 %v2042_v2, %v1162_v27  ;;  %v1238_v34 = vmul.f32 %v2045_v4, %v1163_v28 }
 0x16d   :  { %v1310_v35 = vadd.f32 %v2067_v30, %v1235_v29  ;;  %v1311_v36 = vadd.f32 %v2069_v32, %v1236_v31 }
 0x16e   :  { %v1312_v37 = vadd.f32 %v2047_v6, %v1237_v33  ;;  %v1313_v38 = vadd.f32 %v2049_v8, %v1238_v34  ;;  %v1004_v39 = vpop.f32.mrf.mxu2  ;;  %v1053_v41 = vpop.f32.mrf.mxu3 }
 0x16f   :  { %1374 = vst [vmem:[#allocation13 + $0x50] sm:$0xff] %v1310_v35  ;;  %v1005_v43 = vadd.f32 %v1004_v39, %v2051_v9  ;;  %v1054_v44 = vadd.f32 %v1053_v41, %v2053_v10  ;;  %v909_v45 = vpop.f32.mrf.mxu0  ;;  %v958_v47 = vpop.f32.mrf.mxu1 }
 0x170   :  { %1375 = vst [vmem:[#allocation13 + $0x58] sm:$0xff] %v1311_v36  ;;  %v910_v49 = vadd.f32 %v909_v45, %v2037_v57  ;;  %v959_v50 = vadd.f32 %v958_v47, %v2039_v58  ;;  %v1108_v36 = vld [vmem:[#allocation7 + $0xb0] sm:$0xff] }
 0x171   :  { %1376 = vst [vmem:[#allocation13 + $0x60] sm:$0xff] %v1312_v37  ;;  %v1164_v51 = vadd.f32 %v1100_v40, %v1005_v43  ;;  %v1165_v52 = vadd.f32 %v1101_v42, %v1054_v44  ;;  %v1110_v42 = vld [vmem:[#allocation7 + $0xc0] sm:$0xff]  ;;  %v1111_v44 = vld [vmem:[#allocation7 + $0xc8] sm:$0xff] }
 0x172   :  { %1377 = vst [vmem:[#allocation13 + $0x68] sm:$0xff] %v1313_v38  ;;  %v1166_v53 = vadd.f32 %v1102_v46, %v910_v49  ;;  %v1167_v54 = vadd.f32 %v1103_v48, %v959_v50  ;;  %v1109_v38 = vld [vmem:[#allocation7 + $0xb8] sm:$0xff] }
 0x173   :  { %v1239_v55 = vmul.f32 %v2060_v20, %v1164_v51  ;;  %v1240_v56 = vmul.f32 %v2063_v22, %v1165_v52 }
 0x174   :  { %v1241_v59 = vmul.f32 %v2042_v2, %v1166_v53  ;;  %v1242_v60 = vmul.f32 %v2045_v4, %v1167_v54 }
 0x175   :  { %v1314_v61 = vadd.f32 %v2067_v30, %v1239_v55  ;;  %v1315_v62 = vadd.f32 %v2069_v32, %v1240_v56 }
 0x176   :  { %v1316_v63 = vadd.f32 %v2047_v6, %v1241_v59  ;;  %v1317_v0 = vadd.f32 %v2049_v8, %v1242_v60  ;;  %v1007_v1 = vpop.f32.mrf.mxu2  ;;  %v1056_v5 = vpop.f32.mrf.mxu3 }
 0x177   :  { %1378 = vst [vmem:[#allocation13 + $0x70] sm:$0xff] %v1314_v61  ;;  %v1008_v11 = vadd.f32 %v1007_v1, %v2051_v9  ;;  %v1057_v12 = vadd.f32 %v1056_v5, %v2053_v10  ;;  %v911_v13 = vpop.f32.mrf.mxu0  ;;  %v960_v15 = vpop.f32.mrf.mxu1 }
 0x178   :  { %1379 = vst [vmem:[#allocation13 + $0x78] sm:$0xff] %v1315_v62  ;;  %v912_v17 = vadd.f32 %v911_v13, %v2037_v57  ;;  %v961_v18 = vadd.f32 %v960_v15, %v2039_v58  ;;  %v1112_v62 = vld [vmem:[#allocation7 + $0xd0] sm:$0xff] }
 0x179   :  { %1380 = vst [vmem:[#allocation13 + $0x80] sm:$0xff] %v1316_v63  ;;  %v1168_v19 = vadd.f32 %v1104_v3, %v1008_v11  ;;  %v1169_v21 = vadd.f32 %v1105_v7, %v1057_v12  ;;  %v1114_v7 = vld [vmem:[#allocation7 + $0xe0] sm:$0xff]  ;;  %v1115_v12 = vld [vmem:[#allocation7 + $0xe8] sm:$0xff] }
 0x17a   :  { %1381 = vst [vmem:[#allocation13 + $0x88] sm:$0xff] %v1317_v0  ;;  %v1170_v23 = vadd.f32 %v1106_v14, %v912_v17  ;;  %v1171_v24 = vadd.f32 %v1107_v16, %v961_v18  ;;  %v1113_v0 = vld [vmem:[#allocation7 + $0xd8] sm:$0xff] }
 0x17b   :  { %v1243_v25 = vmul.f32 %v2060_v20, %v1168_v19  ;;  %v1244_v26 = vmul.f32 %v2063_v22, %v1169_v21 }
 0x17c   :  { %v1245_v27 = vmul.f32 %v2042_v2, %v1170_v23  ;;  %v1246_v28 = vmul.f32 %v2045_v4, %v1171_v24 }
 0x17d   :  { %v1318_v29 = vadd.f32 %v2067_v30, %v1243_v25  ;;  %v1319_v31 = vadd.f32 %v2069_v32, %v1244_v26 }
 0x17e   :  { %v1320_v33 = vadd.f32 %v2047_v6, %v1245_v27  ;;  %v1321_v34 = vadd.f32 %v2049_v8, %v1246_v28  ;;  %v1009_v35 = vpop.f32.mrf.mxu2  ;;  %v1058_v37 = vpop.f32.mrf.mxu3 }
 0x17f   :  { %1382 = vst [vmem:[#allocation13 + $0x90] sm:$0xff] %v1318_v29  ;;  %v1010_v39 = vadd.f32 %v1009_v35, %v2051_v9  ;;  %v1059_v40 = vadd.f32 %v1058_v37, %v2053_v10  ;;  %v914_v41 = vpop.f32.mrf.mxu0  ;;  %v963_v43 = vpop.f32.mrf.mxu1 }
 0x180   :  { %1383 = vst [vmem:[#allocation13 + $0x98] sm:$0xff] %v1319_v31  ;;  %v915_v45 = vadd.f32 %v914_v41, %v2037_v57  ;;  %v964_v46 = vadd.f32 %v963_v43, %v2039_v58  ;;  %v1116_v31 = vld [vmem:[#allocation7 + $0xf0] sm:$0xff] }
 0x181   :  { %1384 = vst [vmem:[#allocation13 + $0xa0] sm:$0xff] %v1320_v33  ;;  %v1172_v47 = vadd.f32 %v1108_v36, %v1010_v39  ;;  %v1173_v48 = vadd.f32 %v1109_v38, %v1059_v40  ;;  %v1118_v38 = vld [vmem:[#allocation7 + $0x100] sm:$0xff]  ;;  %v1119_v40 = vld [vmem:[#allocation7 + $0x108] sm:$0xff] }
 0x182   :  { %1385 = vst [vmem:[#allocation13 + $0xa8] sm:$0xff] %v1321_v34  ;;  %v1174_v49 = vadd.f32 %v1110_v42, %v915_v45  ;;  %v1175_v50 = vadd.f32 %v1111_v44, %v964_v46  ;;  %v1117_v34 = vld [vmem:[#allocation7 + $0xf8] sm:$0xff] }
 0x183   :  { %v1247_v51 = vmul.f32 %v2060_v20, %v1172_v47  ;;  %v1248_v52 = vmul.f32 %v2063_v22, %v1173_v48 }
 0x184   :  { %v1249_v53 = vmul.f32 %v2042_v2, %v1174_v49  ;;  %v1250_v54 = vmul.f32 %v2045_v4, %v1175_v50 }
 0x185   :  { %v1322_v55 = vadd.f32 %v2067_v30, %v1247_v51  ;;  %v1323_v56 = vadd.f32 %v2069_v32, %v1248_v52 }
 0x186   :  { %v1324_v59 = vadd.f32 %v2047_v6, %v1249_v53  ;;  %v1325_v60 = vadd.f32 %v2049_v8, %v1250_v54  ;;  %v1012_v61 = vpop.f32.mrf.mxu2  ;;  %v1061_v63 = vpop.f32.mrf.mxu3 }
 0x187   :  { %1386 = vst [vmem:[#allocation13 + $0xb0] sm:$0xff] %v1322_v55  ;;  %v1013_v1 = vadd.f32 %v1012_v61, %v2051_v9  ;;  %v1062_v3 = vadd.f32 %v1061_v63, %v2053_v10  ;;  %v916_v5 = vpop.f32.mrf.mxu0  ;;  %v965_v11 = vpop.f32.mrf.mxu1 }
 0x188   :  { %1387 = vst [vmem:[#allocation13 + $0xb8] sm:$0xff] %v1323_v56  ;;  %v917_v13 = vadd.f32 %v916_v5, %v2037_v57  ;;  %v966_v14 = vadd.f32 %v965_v11, %v2039_v58  ;;  %v1120_v56 = vld [vmem:[#allocation7 + $0x110] sm:$0xff] }
 0x189   :  { %1388 = vst [vmem:[#allocation13 + $0xc0] sm:$0xff] %v1324_v59  ;;  %v1176_v15 = vadd.f32 %v1112_v62, %v1013_v1  ;;  %v1177_v16 = vadd.f32 %v1113_v0, %v1062_v3  ;;  %v1122_v0 = vld [vmem:[#allocation7 + $0x120] sm:$0xff]  ;;  %v1123_v3 = vld [vmem:[#allocation7 + $0x128] sm:$0xff] }
 0x18a   :  { %1389 = vst [vmem:[#allocation13 + $0xc8] sm:$0xff] %v1325_v60  ;;  %v1178_v17 = vadd.f32 %v1114_v7, %v917_v13  ;;  %v1179_v18 = vadd.f32 %v1115_v12, %v966_v14  ;;  %v1121_v60 = vld [vmem:[#allocation7 + $0x118] sm:$0xff] }
 0x18b   :  { %v1251_v19 = vmul.f32 %v2060_v20, %v1176_v15  ;;  %v1252_v21 = vmul.f32 %v2063_v22, %v1177_v16 }
 0x18c   :  { %v1253_v23 = vmul.f32 %v2042_v2, %v1178_v17  ;;  %v1254_v24 = vmul.f32 %v2045_v4, %v1179_v18 }
 0x18d   :  { %v1326_v25 = vadd.f32 %v2067_v30, %v1251_v19  ;;  %v1327_v26 = vadd.f32 %v2069_v32, %v1252_v21 }
 0x18e   :  { %v1328_v27 = vadd.f32 %v2047_v6, %v1253_v23  ;;  %v1329_v28 = vadd.f32 %v2049_v8, %v1254_v24  ;;  %v1014_v29 = vpop.f32.mrf.mxu2  ;;  %v1063_v33 = vpop.f32.mrf.mxu3 }
 0x18f   :  { %1390 = vst [vmem:[#allocation13 + $0xd0] sm:$0xff] %v1326_v25  ;;  %v1015_v35 = vadd.f32 %v1014_v29, %v2051_v9  ;;  %v1064_v36 = vadd.f32 %v1063_v33, %v2053_v10  ;;  %v919_v37 = vpop.f32.mrf.mxu0  ;;  %v968_v39 = vpop.f32.mrf.mxu1 }
 0x190   :  { %1391 = vst [vmem:[#allocation13 + $0xd8] sm:$0xff] %v1327_v26  ;;  %v920_v41 = vadd.f32 %v919_v37, %v2037_v57  ;;  %v969_v42 = vadd.f32 %v968_v39, %v2039_v58  ;;  %v1124_v26 = vld [vmem:[#allocation7 + $0x130] sm:$0xff] }
 0x191   :  { %1392 = vst [vmem:[#allocation13 + $0xe0] sm:$0xff] %v1328_v27  ;;  %v1180_v43 = vadd.f32 %v1116_v31, %v1015_v35  ;;  %v1181_v44 = vadd.f32 %v1117_v34, %v1064_v36  ;;  %v1126_v34 = vld [vmem:[#allocation7 + $0x140] sm:$0xff]  ;;  %v1127_v36 = vld [vmem:[#allocation7 + $0x148] sm:$0xff] }
 0x192   :  { %1393 = vst [vmem:[#allocation13 + $0xe8] sm:$0xff] %v1329_v28  ;;  %v1182_v45 = vadd.f32 %v1118_v38, %v920_v41  ;;  %v1183_v46 = vadd.f32 %v1119_v40, %v969_v42  ;;  %v1125_v28 = vld [vmem:[#allocation7 + $0x138] sm:$0xff] }
 0x193   :  { %v1255_v47 = vmul.f32 %v2060_v20, %v1180_v43  ;;  %v1256_v48 = vmul.f32 %v2063_v22, %v1181_v44 }
 0x194   :  { %v1257_v49 = vmul.f32 %v2042_v2, %v1182_v45  ;;  %v1258_v50 = vmul.f32 %v2045_v4, %v1183_v46 }
 0x195   :  { %v1330_v51 = vadd.f32 %v2067_v30, %v1255_v47  ;;  %v1331_v52 = vadd.f32 %v2069_v32, %v1256_v48 }
 0x196   :  { %v1332_v53 = vadd.f32 %v2047_v6, %v1257_v49  ;;  %v1333_v54 = vadd.f32 %v2049_v8, %v1258_v50  ;;  %v1017_v55 = vpop.f32.mrf.mxu2  ;;  %v1066_v59 = vpop.f32.mrf.mxu3 }
 0x197   :  { %1394 = vst [vmem:[#allocation13 + $0xf0] sm:$0xff] %v1330_v51  ;;  %v1018_v61 = vadd.f32 %v1017_v55, %v2051_v9  ;;  %v1067_v62 = vadd.f32 %v1066_v59, %v2053_v10  ;;  %v921_v63 = vpop.f32.mrf.mxu0  ;;  %v970_v1 = vpop.f32.mrf.mxu1 }
 0x198   :  { %1395 = vst [vmem:[#allocation13 + $0xf8] sm:$0xff] %v1331_v52  ;;  %v922_v5 = vadd.f32 %v921_v63, %v2037_v57  ;;  %v971_v7 = vadd.f32 %v970_v1, %v2039_v58  ;;  %v1128_v52 = vld [vmem:[#allocation7 + $0x150] sm:$0xff] }
 0x199   :  { %1396 = vst [vmem:[#allocation13 + $0x100] sm:$0xff] %v1332_v53  ;;  %v1184_v11 = vadd.f32 %v1120_v56, %v1018_v61  ;;  %v1185_v12 = vadd.f32 %v1121_v60, %v1067_v62  ;;  %v1130_v60 = vld [vmem:[#allocation7 + $0x160] sm:$0xff]  ;;  %v1131_v62 = vld [vmem:[#allocation7 + $0x168] sm:$0xff] }
 0x19a   :  { %1397 = vst [vmem:[#allocation13 + $0x108] sm:$0xff] %v1333_v54  ;;  %v1186_v13 = vadd.f32 %v1122_v0, %v922_v5  ;;  %v1187_v14 = vadd.f32 %v1123_v3, %v971_v7  ;;  %v1129_v54 = vld [vmem:[#allocation7 + $0x158] sm:$0xff] }
 0x19b   :  { %v1259_v15 = vmul.f32 %v2060_v20, %v1184_v11  ;;  %v1260_v16 = vmul.f32 %v2063_v22, %v1185_v12 }
 0x19c   :  { %v1261_v17 = vmul.f32 %v2042_v2, %v1186_v13  ;;  %v1262_v18 = vmul.f32 %v2045_v4, %v1187_v14 }
 0x19d   :  { %v1334_v19 = vadd.f32 %v2067_v30, %v1259_v15  ;;  %v1335_v21 = vadd.f32 %v2069_v32, %v1260_v16 }
 0x19e   :  { %v1336_v23 = vadd.f32 %v2047_v6, %v1261_v17  ;;  %v1337_v24 = vadd.f32 %v2049_v8, %v1262_v18  ;;  %v1019_v25 = vpop.f32.mrf.mxu2  ;;  %v1068_v27 = vpop.f32.mrf.mxu3 }
 0x19f   :  { %1398 = vst [vmem:[#allocation13 + $0x110] sm:$0xff] %v1334_v19  ;;  %v1020_v29 = vadd.f32 %v1019_v25, %v2051_v9  ;;  %v1069_v31 = vadd.f32 %v1068_v27, %v2053_v10  ;;  %v924_v33 = vpop.f32.mrf.mxu0  ;;  %v973_v35 = vpop.f32.mrf.mxu1 }
 0x1a0   :  { %1399 = vst [vmem:[#allocation13 + $0x118] sm:$0xff] %v1335_v21  ;;  %v925_v37 = vadd.f32 %v924_v33, %v2037_v57  ;;  %v974_v38 = vadd.f32 %v973_v35, %v2039_v58  ;;  %v1132_v21 = vld [vmem:[#allocation7 + $0x170] sm:$0xff] }
 0x1a1   :  { %1400 = vst [vmem:[#allocation13 + $0x120] sm:$0xff] %v1336_v23  ;;  %v1188_v39 = vadd.f32 %v1124_v26, %v1020_v29  ;;  %v1189_v40 = vadd.f32 %v1125_v28, %v1069_v31  ;;  %v1134_v28 = vld [vmem:[#allocation7 + $0x180] sm:$0xff]  ;;  %v1135_v31 = vld [vmem:[#allocation7 + $0x188] sm:$0xff] }
 0x1a2   :  { %1401 = vst [vmem:[#allocation13 + $0x128] sm:$0xff] %v1337_v24  ;;  %v1190_v41 = vadd.f32 %v1126_v34, %v925_v37  ;;  %v1191_v42 = vadd.f32 %v1127_v36, %v974_v38  ;;  %v1133_v24 = vld [vmem:[#allocation7 + $0x178] sm:$0xff] }
 0x1a3   :  { %v1263_v43 = vmul.f32 %v2060_v20, %v1188_v39  ;;  %v1264_v44 = vmul.f32 %v2063_v22, %v1189_v40 }
 0x1a4   :  { %v1265_v45 = vmul.f32 %v2042_v2, %v1190_v41  ;;  %v1266_v46 = vmul.f32 %v2045_v4, %v1191_v42 }
 0x1a5   :  { %v1338_v47 = vadd.f32 %v2067_v30, %v1263_v43  ;;  %v1339_v48 = vadd.f32 %v2069_v32, %v1264_v44 }
 0x1a6   :  { %v1340_v49 = vadd.f32 %v2047_v6, %v1265_v45  ;;  %v1341_v50 = vadd.f32 %v2049_v8, %v1266_v46  ;;  %v1022_v51 = vpop.f32.mrf.mxu2  ;;  %v1071_v53 = vpop.f32.mrf.mxu3 }
 0x1a7   :  { %1402 = vst [vmem:[#allocation13 + $0x130] sm:$0xff] %v1338_v47  ;;  %v1023_v55 = vadd.f32 %v1022_v51, %v2051_v9  ;;  %v1072_v56 = vadd.f32 %v1071_v53, %v2053_v10  ;;  %v926_v59 = vpop.f32.mrf.mxu0  ;;  %v975_v61 = vpop.f32.mrf.mxu1 }
 0x1a8   :  { %1403 = vst [vmem:[#allocation13 + $0x138] sm:$0xff] %v1339_v48  ;;  %v927_v63 = vadd.f32 %v926_v59, %v2037_v57  ;;  %v976_v0 = vadd.f32 %v975_v61, %v2039_v58  ;;  %v1136_v48 = vld [vmem:[#allocation7 + $0x190] sm:$0xff] }
 0x1a9   :  { %1404 = vst [vmem:[#allocation13 + $0x140] sm:$0xff] %v1340_v49  ;;  %v1192_v1 = vadd.f32 %v1128_v52, %v1023_v55  ;;  %v1193_v3 = vadd.f32 %v1129_v54, %v1072_v56  ;;  %v1138_v54 = vld [vmem:[#allocation7 + $0x1a0] sm:$0xff]  ;;  %v1139_v56 = vld [vmem:[#allocation7 + $0x1a8] sm:$0xff] }
 0x1aa   :  { %1405 = vst [vmem:[#allocation13 + $0x148] sm:$0xff] %v1341_v50  ;;  %v1194_v5 = vadd.f32 %v1130_v60, %v927_v63  ;;  %v1195_v7 = vadd.f32 %v1131_v62, %v976_v0  ;;  %v1137_v50 = vld [vmem:[#allocation7 + $0x198] sm:$0xff] }
 0x1ab   :  { %v1267_v11 = vmul.f32 %v2060_v20, %v1192_v1  ;;  %v1268_v12 = vmul.f32 %v2063_v22, %v1193_v3 }
 0x1ac   :  { %v1269_v13 = vmul.f32 %v2042_v2, %v1194_v5  ;;  %v1270_v14 = vmul.f32 %v2045_v4, %v1195_v7 }
 0x1ad   :  { %v1342_v15 = vadd.f32 %v2067_v30, %v1267_v11  ;;  %v1343_v16 = vadd.f32 %v2069_v32, %v1268_v12 }
 0x1ae   :  { %v1344_v17 = vadd.f32 %v2047_v6, %v1269_v13  ;;  %v1345_v18 = vadd.f32 %v2049_v8, %v1270_v14  ;;  %v1024_v19 = vpop.f32.mrf.mxu2  ;;  %v1073_v23 = vpop.f32.mrf.mxu3 }
 0x1af   :  { %1406 = vst [vmem:[#allocation13 + $0x150] sm:$0xff] %v1342_v15  ;;  %v1025_v25 = vadd.f32 %v1024_v19, %v2051_v9  ;;  %v1074_v26 = vadd.f32 %v1073_v23, %v2053_v10  ;;  %v929_v27 = vpop.f32.mrf.mxu0  ;;  %v978_v29 = vpop.f32.mrf.mxu1 }
 0x1b0   :  { %1407 = vst [vmem:[#allocation13 + $0x158] sm:$0xff] %v1343_v16  ;;  %v930_v33 = vadd.f32 %v929_v27, %v2037_v57  ;;  %v979_v34 = vadd.f32 %v978_v29, %v2039_v58  ;;  %v1140_v16 = vld [vmem:[#allocation7 + $0x1b0] sm:$0xff] }
 0x1b1   :  { %1408 = vst [vmem:[#allocation13 + $0x160] sm:$0xff] %v1344_v17  ;;  %v1196_v35 = vadd.f32 %v1132_v21, %v1025_v25  ;;  %v1197_v36 = vadd.f32 %v1133_v24, %v1074_v26  ;;  %v1142_v24 = vld [vmem:[#allocation7 + $0x1c0] sm:$0xff]  ;;  %v1143_v26 = vld [vmem:[#allocation7 + $0x1c8] sm:$0xff] }
 0x1b2   :  { %1409 = vst [vmem:[#allocation13 + $0x168] sm:$0xff] %v1345_v18  ;;  %v1198_v37 = vadd.f32 %v1134_v28, %v930_v33  ;;  %v1199_v38 = vadd.f32 %v1135_v31, %v979_v34  ;;  %v1141_v18 = vld [vmem:[#allocation7 + $0x1b8] sm:$0xff] }
 0x1b3   :  { %v1271_v39 = vmul.f32 %v2060_v20, %v1196_v35  ;;  %v1272_v40 = vmul.f32 %v2063_v22, %v1197_v36 }
 0x1b4   :  { %v1273_v41 = vmul.f32 %v2042_v2, %v1198_v37  ;;  %v1274_v42 = vmul.f32 %v2045_v4, %v1199_v38 }
 0x1b5   :  { %v1346_v43 = vadd.f32 %v2067_v30, %v1271_v39  ;;  %v1347_v44 = vadd.f32 %v2069_v32, %v1272_v40 }
 0x1b6   :  { %v1348_v45 = vadd.f32 %v2047_v6, %v1273_v41  ;;  %v1349_v46 = vadd.f32 %v2049_v8, %v1274_v42  ;;  %v1027_v47 = vpop.f32.mrf.mxu2  ;;  %v1076_v49 = vpop.f32.mrf.mxu3 }
 0x1b7   :  { %1410 = vst [vmem:[#allocation13 + $0x170] sm:$0xff] %v1346_v43  ;;  %v1028_v51 = vadd.f32 %v1027_v47, %v2051_v9  ;;  %v1077_v52 = vadd.f32 %v1076_v49, %v2053_v10  ;;  %v931_v53 = vpop.f32.mrf.mxu0  ;;  %v980_v55 = vpop.f32.mrf.mxu1 }
 0x1b8   :  { %1411 = vst [vmem:[#allocation13 + $0x178] sm:$0xff] %v1347_v44  ;;  %v932_v59 = vadd.f32 %v931_v53, %v2037_v57  ;;  %v981_v60 = vadd.f32 %v980_v55, %v2039_v58  ;;  %v1144_v44 = vld [vmem:[#allocation7 + $0x1d0] sm:$0xff] }
 0x1b9   :  { %1412 = vst [vmem:[#allocation13 + $0x180] sm:$0xff] %v1348_v45  ;;  %v1200_v61 = vadd.f32 %v1136_v48, %v1028_v51  ;;  %v1201_v62 = vadd.f32 %v1137_v50, %v1077_v52  ;;  %v1146_v50 = vld [vmem:[#allocation7 + $0x1e0] sm:$0xff]  ;;  %v1147_v52 = vld [vmem:[#allocation7 + $0x1e8] sm:$0xff] }
 0x1ba   :  { %1413 = vst [vmem:[#allocation13 + $0x188] sm:$0xff] %v1349_v46  ;;  %v1202_v63 = vadd.f32 %v1138_v54, %v932_v59  ;;  %v1203_v0 = vadd.f32 %v1139_v56, %v981_v60  ;;  %v1145_v46 = vld [vmem:[#allocation7 + $0x1d8] sm:$0xff] }
 0x1bb   :  { %v1275_v1 = vmul.f32 %v2060_v20, %v1200_v61  ;;  %v1276_v3 = vmul.f32 %v2063_v22, %v1201_v62 }
 0x1bc   :  { %v1277_v5 = vmul.f32 %v2042_v2, %v1202_v63  ;;  %v1278_v7 = vmul.f32 %v2045_v4, %v1203_v0 }
 0x1bd   :  { %v1350_v11 = vadd.f32 %v2067_v30, %v1275_v1  ;;  %v1351_v12 = vadd.f32 %v2069_v32, %v1276_v3 }
 0x1be   :  { %v1352_v13 = vadd.f32 %v2047_v6, %v1277_v5  ;;  %v1353_v14 = vadd.f32 %v2049_v8, %v1278_v7  ;;  %v1029_v15 = vpop.f32.mrf.mxu2  ;;  %v1078_v17 = vpop.f32.mrf.mxu3  ;;  %v1148_v7 = vld [vmem:[#allocation7 + $0x1f0] sm:$0xff] }
 0x1bf   :  { %1414 = vst [vmem:[#allocation13 + $0x190] sm:$0xff] %v1350_v11  ;;  %v1030_v19 = vadd.f32 %v1029_v15, %v2051_v9  ;;  %v1079_v21 = vadd.f32 %v1078_v17, %v2053_v10  ;;  %v934_v23 = vpop.f32.mrf.mxu0  ;;  %v983_v25 = vpop.f32.mrf.mxu1 }
 0x1c0   :  { %1415 = vst [vmem:[#allocation13 + $0x198] sm:$0xff] %v1351_v12  ;;  %v935_v27 = vadd.f32 %v934_v23, %v2037_v57  ;;  %v984_v28 = vadd.f32 %v983_v25, %v2039_v58  ;;  %v1149_v12 = vld [vmem:[#allocation7 + $0x1f8] sm:$0xff] }
 0x1c1   :  { %1416 = vst [vmem:[#allocation13 + $0x1a0] sm:$0xff] %v1352_v13  ;;  %v1204_v29 = vadd.f32 %v1140_v16, %v1030_v19  ;;  %v1205_v31 = vadd.f32 %v1141_v18, %v1079_v21 }
 0x1c2   :  { %1417 = vst [vmem:[#allocation13 + $0x1a8] sm:$0xff] %v1353_v14  ;;  %v1206_v33 = vadd.f32 %v1142_v24, %v935_v27  ;;  %v1207_v34 = vadd.f32 %v1143_v26, %v984_v28 }
 0x1c3   :  { %v1279_v35 = vmul.f32 %v2060_v20, %v1204_v29  ;;  %v1280_v36 = vmul.f32 %v2063_v22, %v1205_v31 }
 0x1c4   :  { %v1281_v37 = vmul.f32 %v2042_v2, %v1206_v33  ;;  %v1282_v38 = vmul.f32 %v2045_v4, %v1207_v34 }
 0x1c5   :  { %v1354_v39 = vadd.f32 %v2067_v30, %v1279_v35  ;;  %v1355_v40 = vadd.f32 %v2069_v32, %v1280_v36 }
 0x1c6   :  { %v1356_v41 = vadd.f32 %v2047_v6, %v1281_v37  ;;  %v1357_v42 = vadd.f32 %v2049_v8, %v1282_v38  ;;  %v1032_v43 = vpop.f32.mrf.mxu2  ;;  %v1081_v45 = vpop.f32.mrf.mxu3 }
 0x1c7   :  { %1418 = vst [vmem:[#allocation13 + $0x1b0] sm:$0xff] %v1354_v39  ;;  %v1033_v47 = vadd.f32 %v1032_v43, %v2051_v9  ;;  %v1082_v48 = vadd.f32 %v1081_v45, %v2053_v10  ;;  %v936_v49 = vpop.f32.mrf.mxu0  ;;  %v985_v51 = vpop.f32.mrf.mxu1 }
 0x1c8   :  { %1419 = vst [vmem:[#allocation13 + $0x1b8] sm:$0xff] %v1355_v40  ;;  %v937_v53 = vadd.f32 %v936_v49, %v2037_v57  ;;  %v986_v54 = vadd.f32 %v985_v51, %v2039_v58 }
 0x1c9   :  { %1420 = vst [vmem:[#allocation13 + $0x1c0] sm:$0xff] %v1356_v41  ;;  %v1208_v55 = vadd.f32 %v1144_v44, %v1033_v47  ;;  %v1209_v56 = vadd.f32 %v1145_v46, %v1082_v48 }
 0x1ca   :  { %1421 = vst [vmem:[#allocation13 + $0x1c8] sm:$0xff] %v1357_v42  ;;  %v1210_v59 = vadd.f32 %v1146_v50, %v937_v53  ;;  %v1211_v60 = vadd.f32 %v1147_v52, %v986_v54 }
 0x1cb   :  { %v1283_v61 = vmul.f32 %v2060_v20, %v1208_v55  ;;  %v1284_v62 = vmul.f32 %v2063_v22, %v1209_v56 }
 0x1cc   :  { %v1285_v63 = vmul.f32 %v2042_v2, %v1210_v59  ;;  %v1286_v0 = vmul.f32 %v2045_v4, %v1211_v60 }
 0x1cd   :  { %v1358_v1 = vadd.f32 %v2067_v30, %v1283_v61  ;;  %v1359_v57 = vadd.f32 %v2069_v32, %v1284_v62 }
 0x1ce   :  { %v1360_v58 = vadd.f32 %v2047_v6, %v1285_v63  ;;  %v1361_v3 = vadd.f32 %v2049_v8, %v1286_v0  ;;  %v1034_v5 = vpop.f32.mrf.mxu2  ;;  %v1083_v11 = vpop.f32.mrf.mxu3 }
 0x1cf   :  { %1422 = vst [vmem:[#allocation13 + $0x1d0] sm:$0xff] %v1358_v1  ;;  %v1035_v13 = vadd.f32 %v1034_v5, %v2051_v9  ;;  %v1084_v14 = vadd.f32 %v1083_v11, %v2053_v10 }
 0x1d0   :  { %1423 = vst [vmem:[#allocation13 + $0x1d8] sm:$0xff] %v1359_v57 }
 0x1d1   :  { %1424 = vst [vmem:[#allocation13 + $0x1e0] sm:$0xff] %v1360_v58  ;;  %v1212_v2 = vadd.f32 %v1148_v7, %v1035_v13  ;;  %v1213_v4 = vadd.f32 %v1149_v12, %v1084_v14 }
 0x1d2   :  { %1425 = vst [vmem:[#allocation13 + $0x1e8] sm:$0xff] %v1361_v3 }
 0x1d3   :  { %v1287_v15 = vmul.f32 %v2060_v20, %v1212_v2  ;;  %v1288_v6 = vmul.f32 %v2063_v22, %v1213_v4 }
 0x1d5   :  { %v1362_v8 = vadd.f32 %v2067_v30, %v1287_v15  ;;  %v1363_v9 = vadd.f32 %v2069_v32, %v1288_v6 }
 0x1d7   :  { %1426 = vst [vmem:[#allocation13 + $0x1f0] sm:$0xff] %v1362_v8 }
 0x1d8   :  { %1427 = vst [vmem:[#allocation13 + $0x1f8] sm:$0xff] %v1363_v9 }
 0x1d9   :  { %1440 = dma.vmem_to_hbm [thread:$0]  %s1433_s5, 8192, %s1435_s9, [#allocation4], %s1970_s17, %s1970_s17, %s1971_s18  }
 0x1da   :  { %1961 = dma.done.wait [#allocation4], 8192  }
 0x1db   :  { %1962 = vsyncadd [#allocation4], 4294959104 }
 0x1dc   :  { %1445 = vsyncpa [#allocation3], 1 }
 0x1dd   :  { %1446 = vsyncpa [#allocation6], 1 }
 0x1de   :  { %1447 = vsyncpa [#allocation9], 1 }
 0x1df   :  { %1448 = vsyncpa [#allocation12], 1 }
 0x1e0   :  { %1449 = vsyncpa [#allocation4], 1 }

</bundles_post_ra>
